<compile_context>
chip_gen: v7x
topology: tpu7x:2x2x1
jax: 0.10.0
libtpu: 0.0.40
codegen_flags: <defaults>
</compile_context>

<pallas_src>
import jax
import jax.numpy as jnp
from jax import lax
from jax.experimental import pallas as pl
from jax.experimental.pallas import tpu as pltpu

# ----------------------------- model sizes ---------------------------------
D_MODEL = 32
N_HEADS = 4
D_K = D_MODEL // N_HEADS
D_FF = 64
N_LAYERS = 2
DIM_G = 64          # sinusoidal geometry-embedding width (wave_len = 1000)
LN_EPS = 1e-6

# Matmul-operand dtype.  float32 keeps parity with the PyTorch reference;
# jnp.bfloat16 uses the native MXU rate on v6e/v7x (accumulation stays f32).
MXU_DTYPE = jnp.float32


# ----------------------------- fused Pallas kernel --------------------------

def _encoder_kernel(x_ref, bias_ref, wqkv_ref, wo_ref, w1_ref, w2_ref, vec_ref,
                    o_ref):
    """Whole encoder (all layers + final LN) for one block of batch elements.

    Activations are feature-major ([D, R], R = block_batch * seq), so every
    matmul is canonical or contract-minor, per-head Q/K/V are aligned sublane
    slices, and there are no lane slices / transposes inside the kernel.
    """
    L, threeD, D = wqkv_ref.shape
    H = wo_ref.shape[0] // L
    dk = wo_ref.shape[2]
    FF = w1_ref.shape[1]
    R = x_ref.shape[2]
    f32 = jnp.float32
    mx = lambda a: a.astype(wqkv_ref.dtype)     # matmul-operand dtype (f32/bf16)

    def col(idx, width):
        # one packed bias / LayerNorm vector as a [width, 1] column (static slice)
        return vec_ref[0:width, idx:idx + 1]

    def layer_norm(v, g, b):
        # torch.Tensor.std semantics: unbiased /(D-1), divide by (std + eps).
        mean = jnp.mean(v, axis=0, keepdims=True)
        diff = v - mean
        var = jnp.sum(diff * diff, axis=0, keepdims=True) * (1.0 / (D - 1))
        inv = pl.reciprocal(jnp.sqrt(var) + LN_EPS, approx=True)
        return g * (diff * inv) + b

    xT = x_ref[0].astype(f32)                                          # [D, R]

    for l in range(L):
        base = 8 * l
        # ---- sublayer 0: x + self_attn(norm(x))  (dropout omitted; eval) ----
        xn = layer_norm(xT, col(base + 4, D), col(base + 5, D))
        qkvT = jnp.dot(wqkv_ref[l], mx(xn),
                       preferred_element_type=f32) + col(base + 0, threeD)  # [3D, R]
        attnT = jnp.zeros((D, R), f32)
        for h in range(H):                       # aligned sublane slices only
            q = qkvT[h * dk:(h + 1) * dk, :]                           # [dk, R]
            k = qkvT[D + h * dk:D + (h + 1) * dk, :]
            v = qkvT[2 * D + h * dk:2 * D + (h + 1) * dk, :]
            # scores[i, j] = <q[:, i], k[:, j]>  (1/sqrt(dk) folded into Wq)
            s = lax.dot_general(mx(q), mx(k), (((0,), (0,)), ((), ())),
                                preferred_element_type=f32)            # [R, R]
            # precomputed: geometry bias + key mask + cross-batch block mask
            s = s + bias_ref[0, l * H + h]
            s = s - jnp.max(s, axis=-1, keepdims=True)
            p = jnp.exp(s)
            p = p * pl.reciprocal(jnp.sum(p, axis=-1, keepdims=True), approx=True)
            # o^T[d, i] = sum_j v[d, j] * p[i, j]
            oT = lax.dot_general(mx(v), mx(p), (((1,), (1,)), ((), ())),
                                 preferred_element_type=f32)           # [dk, R]
            # head-concat + output projection fused: sum_h Wo_h^T @ o_h^T
            attnT = attnT + jnp.dot(wo_ref[l * H + h], mx(oT),
                                    preferred_element_type=f32)        # [D, R]
        xT = xT + attnT + col(base + 2, D)

        # ---- sublayer 1: x + ffn(norm(x)) ----
        xn = layer_norm(xT, col(base + 6, D), col(base + 7, D))
        hid = jnp.maximum(
            jnp.dot(w1_ref[l], mx(xn), preferred_element_type=f32) + col(base + 1, FF),
            0.0)                                                        # [FF, R]
        xT = xT + jnp.dot(w2_ref[l], mx(hid),
                          preferred_element_type=f32) + col(base + 3, D)

    # final LayerNorm
    xT = layer_norm(xT, col(8 * L + 0, D), col(8 * L + 1, D))
    o_ref[0] = xT.astype(o_ref.dtype)


# ----------------------------- parameter packing -----------------------------

def pack_params(params, mxu_dtype=MXU_DTYPE):
    """Repack per-layer weights for the fused, feature-major kernel.

    * Wq|Wk|Wv concatenated, pre-transposed to [L, 3D, D]; 1/sqrt(dk) folded
      into the Q rows (and bq).
    * W_o stored per head, pre-transposed: [L*H, D, dk].
    * W1 / W2 pre-transposed (activations are feature-major in the kernel).
    * All 1-D bias / LayerNorm vectors packed into one [3D, 8L+2] column table.
    * Geometry projections (W_geo, b_geo) stay separate: consumed by the
      wrapper, which precomputes the full per-(layer, head) attention bias.
    """
    layers = params["layers"]
    L = len(layers)
    D = layers[0]["wq"].shape[0]
    H = layers[0]["w_geo"].shape[1]
    dk = D // H
    st = lambda k: jnp.stack([lp[k] for lp in layers])

    scale = 1.0 / float(dk) ** 0.5
    wqkv = jnp.concatenate([st("wq") * scale, st("wk"), st("wv")], axis=-1)  # [L, D, 3D]
    bqkv = jnp.concatenate([st("bq") * scale, st("bk"), st("bv")], axis=-1)  # [L, 3D]
    woT = (st("wo").reshape(L, H, dk, D).transpose(0, 1, 3, 2)
           .reshape(L * H, D, dk))                                           # [L*H, D, dk]

    pad = lambda v: jnp.pad(v, ((0, 0), (0, 3 * D - v.shape[-1])))
    per_layer = jnp.stack(
        [bqkv, pad(st("b1")), pad(st("bo")), pad(st("b2")),
         pad(st("ln1_g")), pad(st("ln1_b")), pad(st("ln2_g")), pad(st("ln2_b"))],
        axis=1).reshape(8 * L, 3 * D)
    finals = jnp.stack([jnp.pad(params["lnf_g"], (0, 2 * D)),
                        jnp.pad(params["lnf_b"], (0, 2 * D))])
    vecs = jnp.concatenate([per_layer, finals], axis=0).T                    # [3D, 8L+2]

    return dict(
        wqkv_t=wqkv.transpose(0, 2, 1).astype(mxu_dtype),    # [L, 3D, D]
        woT=woT.astype(mxu_dtype),                            # [L*H, D, dk]
        w1T=st("w1").transpose(0, 2, 1).astype(mxu_dtype),    # [L, FF, D]
        w2T=st("w2").transpose(0, 2, 1).astype(mxu_dtype),    # [L, D, FF]
        vecs=vecs.astype(jnp.float32),                         # [3D, 8L+2]
        w_geo=st("w_geo").astype(jnp.float32),                 # [L, DIM_G, H]
        b_geo=st("b_geo").astype(jnp.float32),                 # [L, H]
    )


# ----------------------------- wrapper (XLA side) ----------------------------

def _box_attention_bias(box, mask, w_geo, b_geo, wave_len=1000.0):
    """Relation-transformer geometry bias + additive key mask, per (layer, head).

    box is (cx, cy, w, h).  Features follow BoxRelationalEmbedding: log-ratio
    features -> sinusoidal embedding of width DIM_G -> per-layer/per-head
    linear -> relu -> log(clamp(., 1e-6)).  Returns [B, L, H, S, S] float32.
    """
    B, S, _ = box.shape
    L, DG, H = w_geo.shape
    cx, cy, w, h = box[..., 0], box[..., 1], box[..., 2], box[..., 3]
    dx = jnp.log(jnp.maximum(jnp.abs(cx[:, :, None] - cx[:, None, :]) / w[:, :, None], 1e-3))
    dy = jnp.log(jnp.maximum(jnp.abs(cy[:, :, None] - cy[:, None, :]) / h[:, :, None], 1e-3))
    dw = jnp.log(w[:, None, :] / w[:, :, None])
    dh = jnp.log(h[:, None, :] / h[:, :, None])
    pos = jnp.stack([dx, dy, dw, dh], axis=-1)                               # [B,S,S,4]
    nf = DG // 8
    freq = 1.0 / (wave_len ** (jnp.arange(nf, dtype=jnp.float32) / nf))
    ang = ((100.0 * pos)[..., None] * freq).reshape(B, S, S, 4 * nf)
    emb = jnp.concatenate([jnp.sin(ang), jnp.cos(ang)], axis=-1)             # [B,S,S,DG]
    wg = jnp.einsum("bijg,lgh->blhij", emb, w_geo) + b_geo[None, :, :, None, None]
    geo = jnp.log(jnp.maximum(jax.nn.relu(wg), 1e-6))                        # [B,L,H,S,S]
    key_mask = jnp.where(mask > 0, 0.0, -1e9)[:, None, None, None, :].astype(jnp.float32)
    return geo + key_mask


def _pick_block_batch(B, S, target_rows=64):
    """Largest divisor of B with block_batch * S roughly <= target_rows."""
    bb = max(1, min(B, max(1, target_rows // S)))
    while B % bb:
        bb -= 1
    return bb


@jax.jit
def encoder_forward(x, box, mask, packed):
    """x: [B,S,D], box: [B,S,4] (cx,cy,w,h), mask: [B,S] (1 keep / 0 pad)."""
    B, S, D = x.shape
    L, threeD, _ = packed["wqkv_t"].shape
    H = packed["w_geo"].shape[2]
    LH, _, dk = packed["woT"].shape
    FF = packed["w1T"].shape[1]
    NV = packed["vecs"].shape[1]

    BB = _pick_block_batch(B, S)          # batch elements fused per grid step
    NB = B // BB
    R = BB * S                            # rows handled by one grid step

    # Per-(layer, head) attention bias, hoisted out of the kernel entirely:
    # geometry term + key mask, assembled block-diagonally over the BB batch
    # elements of a grid step (cross-batch blocks = -1e9).
    # NOTE: O(L*H*S^2) per batch; for very large S compute it in-kernel instead.
    bias = _box_attention_bias(box, mask, packed["w_geo"], packed["b_geo"])  # [B,L,H,S,S]
    bias = bias.reshape(NB, BB, L, H, S, S).transpose(0, 2, 3, 1, 4, 5)      # [NB,L,H,BB,S,S]
    same_batch = jnp.eye(BB, dtype=bool)[None, None, None, :, None, :, None]
    bias = jnp.where(same_batch, bias[:, :, :, :, :, None, :], -1e9)
    bias = bias.reshape(NB, L * H, R, R).astype(jnp.float32)

    # Feature-major activations (one XLA transpose outside the kernel).
    xT = x.reshape(NB, R, D).swapaxes(1, 2).astype(jnp.float32)              # [NB, D, R]

    const = lambda shape: pl.BlockSpec(shape, lambda nb, s=shape: (0,) * len(s))
    out = pl.pallas_call(
        _encoder_kernel,
        out_shape=jax.ShapeDtypeStruct((NB, D, R), jnp.float32),
        grid=(NB,),
        in_specs=[
            pl.BlockSpec((1, D, R), lambda nb: (nb, 0, 0)),              # x^T per block
            pl.BlockSpec((1, L * H, R, R), lambda nb: (nb, 0, 0, 0)),    # attention bias
            const((L, threeD, D)),                                       # Wqkv^T
            const((LH, D, dk)),                                          # Wo^T per head
            const((L, FF, D)),                                           # W1^T
            const((L, D, FF)),                                           # W2^T
            const((threeD, NV)),                                         # packed vectors
        ],
        out_specs=pl.BlockSpec((1, D, R), lambda nb: (nb, 0, 0)),
        # "parallel" vs "arbitrary" does not change codegen; real 2-TC sharding
        # on v7x would need CORE_PARALLEL and far more per-step work than this.
        compiler_params=pltpu.CompilerParams(dimension_semantics=("arbitrary",)),
    )(xT, bias, packed["wqkv_t"], packed["woT"], packed["w1T"], packed["w2T"],
      packed["vecs"])

    return out.swapaxes(1, 2).reshape(B, S, D).astype(x.dtype)


# ----------------------------- parameter init --------------------------------

def init_params(key):
    def dense(k, fan_in, fan_out):
        return jax.random.normal(k, (fan_in, fan_out), jnp.float32) * 0.02

    layers = []
    for _ in range(N_LAYERS):
        ks = jax.random.split(key, 8)
        key = ks[0]
        layers.append(dict(
            wq=dense(ks[1], D_MODEL, D_MODEL), bq=jnp.zeros((D_MODEL,), jnp.float32),
            wk=dense(ks[2], D_MODEL, D_MODEL), bk=jnp.zeros((D_MODEL,), jnp.float32),
            wv=dense(ks[3], D_MODEL, D_MODEL), bv=jnp.zeros((D_MODEL,), jnp.float32),
            wo=dense(ks[4], D_MODEL, D_MODEL), bo=jnp.zeros((D_MODEL,), jnp.float32),
            w_geo=dense(ks[5], DIM_G, N_HEADS), b_geo=jnp.zeros((N_HEADS,), jnp.float32),
            w1=dense(ks[6], D_MODEL, D_FF), b1=jnp.zeros((D_FF,), jnp.float32),
            w2=dense(ks[7], D_FF, D_MODEL), b2=jnp.zeros((D_MODEL,), jnp.float32),
            ln1_g=jnp.ones((D_MODEL,), jnp.float32), ln1_b=jnp.zeros((D_MODEL,), jnp.float32),
            ln2_g=jnp.ones((D_MODEL,), jnp.float32), ln2_b=jnp.zeros((D_MODEL,), jnp.float32),
        ))
    return dict(layers=layers,
                lnf_g=jnp.ones((D_MODEL,), jnp.float32),
                lnf_b=jnp.zeros((D_MODEL,), jnp.float32))


# ----------------------------- demo ------------------------------------------

if __name__ == "__main__":
    B, S = 2, 8
    root = jax.random.PRNGKey(0)
    k_p, k_x, k_xy, k_wh = jax.random.split(root, 4)

    params = init_params(k_p)
    packed = pack_params(params)

    x = jax.random.normal(k_x, (B, S, D_MODEL), jnp.float32)
    box_xy = jax.random.uniform(k_xy, (B, S, 2), jnp.float32)               # centers in [0,1)
    box_wh = jax.random.uniform(k_wh, (B, S, 2), jnp.float32, 0.1, 1.0)     # positive w,h
    box = jnp.concatenate([box_xy, box_wh], axis=-1)                        # [B,S,4]
    mask = jnp.ones((B, S), jnp.float32).at[1, -2:].set(0.0)                # pad last 2 of batch 1

    out = encoder_forward(x, box, mask, packed)
    jax.block_until_ready(out)
    assert out.shape == (B, S, D_MODEL)
    assert bool(jnp.all(jnp.isfinite(out)))
    print("KERNEL_OK")
</pallas_src>

<mosaic_0001>
module attributes {stable_mosaic.version = 11 : i64} {
  func.func @_encoder_kernel(%arg0: i32, %arg1: memref<1x32x16xf32, #tpu.memory_space<vmem>>, %arg2: memref<1x8x16x16xf32, #tpu.memory_space<vmem>>, %arg3: memref<2x96x32xf32, #tpu.memory_space<vmem>>, %arg4: memref<8x32x8xf32, #tpu.memory_space<vmem>>, %arg5: memref<2x64x32xf32, #tpu.memory_space<vmem>>, %arg6: memref<2x32x64xf32, #tpu.memory_space<vmem>>, %arg7: memref<96x18xf32, #tpu.memory_space<vmem>>, %arg8: memref<1x32x16xf32, #tpu.memory_space<vmem>>) attributes {dimension_semantics = [#tpu.dimension_semantics<arbitrary>], iteration_bounds = array<i64: 1>, scalar_prefetch = 0 : i64, scratch_operands = 0 : i64, tpu.core_type = #tpu.core_type<tc>, window_params = [{transform_indices = @transform_0, window_bounds = array<i64: 1, 32, 16>}, {transform_indices = @transform_1, window_bounds = array<i64: 1, 8, 16, 16>}, {pipeline_mode = #tpu.pipeline_mode<synchronous>, transform_indices = @transform_2, window_bounds = array<i64: 2, 96, 32>}, {pipeline_mode = #tpu.pipeline_mode<synchronous>, transform_indices = @transform_3, window_bounds = array<i64: 8, 32, 8>}, {pipeline_mode = #tpu.pipeline_mode<synchronous>, transform_indices = @transform_4, window_bounds = array<i64: 2, 64, 32>}, {pipeline_mode = #tpu.pipeline_mode<synchronous>, transform_indices = @transform_5, window_bounds = array<i64: 2, 32, 64>}, {pipeline_mode = #tpu.pipeline_mode<synchronous>, transform_indices = @transform_6, window_bounds = array<i64: 96, 18>}, {transform_indices = @transform_7, window_bounds = array<i64: 1, 32, 16>}]} {
    %c0 = arith.constant 0 : index
    %c0_0 = arith.constant 0 : index
    %c0_1 = arith.constant 0 : index
    %0 = vector.load %arg1[%c0, %c0_0, %c0_1] : memref<1x32x16xf32, #tpu.memory_space<vmem>>, vector<1x32x16xf32>
    %1 = vector.shape_cast %0 : vector<1x32x16xf32> to vector<32x16xf32>
    %c0_2 = arith.constant 0 : index
    %c4 = arith.constant 4 : index
    %2 = vector.load %arg7[%c0_2, %c4] : memref<96x18xf32, #tpu.memory_space<vmem>>, vector<32x1xf32>
    %c0_3 = arith.constant 0 : index
    %c5 = arith.constant 5 : index
    %3 = vector.load %arg7[%c0_3, %c5] : memref<96x18xf32, #tpu.memory_space<vmem>>, vector<32x1xf32>
    %cst = arith.constant dense<0.000000e+00> : vector<16xf32>
    %4 = vector.multi_reduction <add>, %1, %cst [0] : vector<32x16xf32> to vector<16xf32>
    %5 = vector.shape_cast %4 : vector<16xf32> to vector<1x16xf32>
    %cst_4 = arith.constant 3.200000e+01 : f32
    %6 = vector.broadcast %cst_4 : f32 to vector<1x16xf32>
    %7 = arith.divf %5, %6 : vector<1x16xf32>
    %8 = vector.broadcast %7 : vector<1x16xf32> to vector<32x16xf32>
    %9 = arith.subf %1, %8 : vector<32x16xf32>
    %10 = arith.mulf %9, %9 : vector<32x16xf32>
    %cst_5 = arith.constant dense<0.000000e+00> : vector<16xf32>
    %11 = vector.multi_reduction <add>, %10, %cst_5 [0] : vector<32x16xf32> to vector<16xf32>
    %12 = vector.shape_cast %11 : vector<16xf32> to vector<1x16xf32>
    %cst_6 = arith.constant 0.0322580636 : f32
    %13 = vector.broadcast %cst_6 : f32 to vector<1x16xf32>
    %14 = arith.mulf %12, %13 : vector<1x16xf32>
    %15 = math.sqrt %14 : vector<1x16xf32>
    %cst_7 = arith.constant 9.99999997E-7 : f32
    %16 = vector.broadcast %cst_7 : f32 to vector<1x16xf32>
    %17 = arith.addf %15, %16 : vector<1x16xf32>
    %18 = tpu.reciprocal %17 {approx = true} : vector<1x16xf32> -> vector<1x16xf32>
    %19 = vector.broadcast %18 : vector<1x16xf32> to vector<32x16xf32>
    %20 = arith.mulf %9, %19 : vector<32x16xf32>
    %21 = vector.broadcast %2 : vector<32x1xf32> to vector<32x16xf32>
    %22 = arith.mulf %21, %20 : vector<32x16xf32>
    %23 = vector.broadcast %3 : vector<32x1xf32> to vector<32x16xf32>
    %24 = arith.addf %22, %23 : vector<32x16xf32>
    %c0_8 = arith.constant 0 : index
    %c0_9 = arith.constant 0 : index
    %c0_10 = arith.constant 0 : index
    %25 = vector.load %arg3[%c0_8, %c0_9, %c0_10] : memref<2x96x32xf32, #tpu.memory_space<vmem>>, vector<1x96x32xf32>
    %26 = vector.shape_cast %25 : vector<1x96x32xf32> to vector<96x32xf32>
    %cst_11 = arith.constant dense<0.000000e+00> : vector<96x16xf32>
    %27 = tpu.matmul %26, %24, %cst_11 {dimension_numbers = #tpu.dot_dimension_numbers<[1], [0], [0], [1], [0, 0, 1, 1], [], []>} : vector<96x32xf32>, vector<32x16xf32>, vector<96x16xf32> -> vector<96x16xf32>
    %c0_12 = arith.constant 0 : index
    %c0_13 = arith.constant 0 : index
    %28 = vector.load %arg7[%c0_12, %c0_13] : memref<96x18xf32, #tpu.memory_space<vmem>>, vector<96x1xf32>
    %29 = vector.broadcast %28 : vector<96x1xf32> to vector<96x16xf32>
    %30 = arith.addf %27, %29 : vector<96x16xf32>
    %cst_14 = arith.constant 0.000000e+00 : f32
    %31 = vector.broadcast %cst_14 : f32 to vector<32x16xf32>
    %32 = vector.extract_strided_slice %30 {offsets = [0, 0], sizes = [8, 16], strides = [1, 1]} : vector<96x16xf32> to vector<8x16xf32>
    %33 = vector.extract_strided_slice %30 {offsets = [32, 0], sizes = [8, 16], strides = [1, 1]} : vector<96x16xf32> to vector<8x16xf32>
    %34 = vector.extract_strided_slice %30 {offsets = [64, 0], sizes = [8, 16], strides = [1, 1]} : vector<96x16xf32> to vector<8x16xf32>
    %cst_15 = arith.constant dense<0.000000e+00> : vector<16x16xf32>
    %35 = tpu.matmul %32, %33, %cst_15 {dimension_numbers = #tpu.dot_dimension_numbers<[0], [0], [1], [1], [0, 1, 1, 1], [], []>} : vector<8x16xf32>, vector<8x16xf32>, vector<16x16xf32> -> vector<16x16xf32>
    %c0_16 = arith.constant 0 : index
    %c0_17 = arith.constant 0 : index
    %c0_18 = arith.constant 0 : index
    %c0_19 = arith.constant 0 : index
    %36 = vector.load %arg2[%c0_16, %c0_17, %c0_18, %c0_19] : memref<1x8x16x16xf32, #tpu.memory_space<vmem>>, vector<1x1x16x16xf32>
    %37 = vector.shape_cast %36 : vector<1x1x16x16xf32> to vector<16x16xf32>
    %38 = arith.addf %35, %37 : vector<16x16xf32>
    %cst_20 = arith.constant dense<0xFF800000> : vector<16xf32>
    %39 = vector.multi_reduction <maximumf>, %38, %cst_20 [1] : vector<16x16xf32> to vector<16xf32>
    %40 = vector.shape_cast %39 : vector<16xf32> to vector<16x1xf32>
    %41 = vector.broadcast %40 : vector<16x1xf32> to vector<16x16xf32>
    %42 = arith.subf %38, %41 : vector<16x16xf32>
    %43 = math.exp %42 : vector<16x16xf32>
    %cst_21 = arith.constant dense<0.000000e+00> : vector<16xf32>
    %44 = vector.multi_reduction <add>, %43, %cst_21 [1] : vector<16x16xf32> to vector<16xf32>
    %45 = vector.shape_cast %44 : vector<16xf32> to vector<16x1xf32>
    %46 = tpu.reciprocal %45 {approx = true} : vector<16x1xf32> -> vector<16x1xf32>
    %47 = vector.broadcast %46 : vector<16x1xf32> to vector<16x16xf32>
    %48 = arith.mulf %43, %47 : vector<16x16xf32>
    %cst_22 = arith.constant dense<0.000000e+00> : vector<8x16xf32>
    %49 = tpu.matmul %34, %48, %cst_22 {dimension_numbers = #tpu.dot_dimension_numbers<[1], [1], [0], [0], [0, 0, 1, 0], [], []>} : vector<8x16xf32>, vector<16x16xf32>, vector<8x16xf32> -> vector<8x16xf32>
    %c0_23 = arith.constant 0 : index
    %c0_24 = arith.constant 0 : index
    %c0_25 = arith.constant 0 : index
    %50 = vector.load %arg4[%c0_23, %c0_24, %c0_25] : memref<8x32x8xf32, #tpu.memory_space<vmem>>, vector<1x32x8xf32>
    %51 = vector.shape_cast %50 : vector<1x32x8xf32> to vector<32x8xf32>
    %cst_26 = arith.constant dense<0.000000e+00> : vector<32x16xf32>
    %52 = tpu.matmul %51, %49, %cst_26 {dimension_numbers = #tpu.dot_dimension_numbers<[1], [0], [0], [1], [0, 0, 1, 1], [], []>} : vector<32x8xf32>, vector<8x16xf32>, vector<32x16xf32> -> vector<32x16xf32>
    %53 = arith.addf %31, %52 : vector<32x16xf32>
    %54 = vector.extract_strided_slice %30 {offsets = [8, 0], sizes = [8, 16], strides = [1, 1]} : vector<96x16xf32> to vector<8x16xf32>
    %55 = vector.extract_strided_slice %30 {offsets = [40, 0], sizes = [8, 16], strides = [1, 1]} : vector<96x16xf32> to vector<8x16xf32>
    %56 = vector.extract_strided_slice %30 {offsets = [72, 0], sizes = [8, 16], strides = [1, 1]} : vector<96x16xf32> to vector<8x16xf32>
    %cst_27 = arith.constant dense<0.000000e+00> : vector<16x16xf32>
    %57 = tpu.matmul %54, %55, %cst_27 {dimension_numbers = #tpu.dot_dimension_numbers<[0], [0], [1], [1], [0, 1, 1, 1], [], []>} : vector<8x16xf32>, vector<8x16xf32>, vector<16x16xf32> -> vector<16x16xf32>
    %c0_28 = arith.constant 0 : index
    %c1 = arith.constant 1 : index
    %c0_29 = arith.constant 0 : index
    %c0_30 = arith.constant 0 : index
    %58 = vector.load %arg2[%c0_28, %c1, %c0_29, %c0_30] : memref<1x8x16x16xf32, #tpu.memory_space<vmem>>, vector<1x1x16x16xf32>
    %59 = vector.shape_cast %58 : vector<1x1x16x16xf32> to vector<16x16xf32>
    %60 = arith.addf %57, %59 : vector<16x16xf32>
    %cst_31 = arith.constant dense<0xFF800000> : vector<16xf32>
    %61 = vector.multi_reduction <maximumf>, %60, %cst_31 [1] : vector<16x16xf32> to vector<16xf32>
    %62 = vector.shape_cast %61 : vector<16xf32> to vector<16x1xf32>
    %63 = vector.broadcast %62 : vector<16x1xf32> to vector<16x16xf32>
    %64 = arith.subf %60, %63 : vector<16x16xf32>
    %65 = math.exp %64 : vector<16x16xf32>
    %cst_32 = arith.constant dense<0.000000e+00> : vector<16xf32>
    %66 = vector.multi_reduction <add>, %65, %cst_32 [1] : vector<16x16xf32> to vector<16xf32>
    %67 = vector.shape_cast %66 : vector<16xf32> to vector<16x1xf32>
    %68 = tpu.reciprocal %67 {approx = true} : vector<16x1xf32> -> vector<16x1xf32>
    %69 = vector.broadcast %68 : vector<16x1xf32> to vector<16x16xf32>
    %70 = arith.mulf %65, %69 : vector<16x16xf32>
    %cst_33 = arith.constant dense<0.000000e+00> : vector<8x16xf32>
    %71 = tpu.matmul %56, %70, %cst_33 {dimension_numbers = #tpu.dot_dimension_numbers<[1], [1], [0], [0], [0, 0, 1, 0], [], []>} : vector<8x16xf32>, vector<16x16xf32>, vector<8x16xf32> -> vector<8x16xf32>
    %c1_34 = arith.constant 1 : index
    %c0_35 = arith.constant 0 : index
    %c0_36 = arith.constant 0 : index
    %72 = vector.load %arg4[%c1_34, %c0_35, %c0_36] : memref<8x32x8xf32, #tpu.memory_space<vmem>>, vector<1x32x8xf32>
    %73 = vector.shape_cast %72 : vector<1x32x8xf32> to vector<32x8xf32>
    %cst_37 = arith.constant dense<0.000000e+00> : vector<32x16xf32>
    %74 = tpu.matmul %73, %71, %cst_37 {dimension_numbers = #tpu.dot_dimension_numbers<[1], [0], [0], [1], [0, 0, 1, 1], [], []>} : vector<32x8xf32>, vector<8x16xf32>, vector<32x16xf32> -> vector<32x16xf32>
    %75 = arith.addf %53, %74 : vector<32x16xf32>
    %76 = vector.extract_strided_slice %30 {offsets = [16, 0], sizes = [8, 16], strides = [1, 1]} : vector<96x16xf32> to vector<8x16xf32>
    %77 = vector.extract_strided_slice %30 {offsets = [48, 0], sizes = [8, 16], strides = [1, 1]} : vector<96x16xf32> to vector<8x16xf32>
    %78 = vector.extract_strided_slice %30 {offsets = [80, 0], sizes = [8, 16], strides = [1, 1]} : vector<96x16xf32> to vector<8x16xf32>
    %cst_38 = arith.constant dense<0.000000e+00> : vector<16x16xf32>
    %79 = tpu.matmul %76, %77, %cst_38 {dimension_numbers = #tpu.dot_dimension_numbers<[0], [0], [1], [1], [0, 1, 1, 1], [], []>} : vector<8x16xf32>, vector<8x16xf32>, vector<16x16xf32> -> vector<16x16xf32>
    %c0_39 = arith.constant 0 : index
    %c2 = arith.constant 2 : index
    %c0_40 = arith.constant 0 : index
    %c0_41 = arith.constant 0 : index
    %80 = vector.load %arg2[%c0_39, %c2, %c0_40, %c0_41] : memref<1x8x16x16xf32, #tpu.memory_space<vmem>>, vector<1x1x16x16xf32>
    %81 = vector.shape_cast %80 : vector<1x1x16x16xf32> to vector<16x16xf32>
    %82 = arith.addf %79, %81 : vector<16x16xf32>
    %cst_42 = arith.constant dense<0xFF800000> : vector<16xf32>
    %83 = vector.multi_reduction <maximumf>, %82, %cst_42 [1] : vector<16x16xf32> to vector<16xf32>
    %84 = vector.shape_cast %83 : vector<16xf32> to vector<16x1xf32>
    %85 = vector.broadcast %84 : vector<16x1xf32> to vector<16x16xf32>
    %86 = arith.subf %82, %85 : vector<16x16xf32>
    %87 = math.exp %86 : vector<16x16xf32>
    %cst_43 = arith.constant dense<0.000000e+00> : vector<16xf32>
    %88 = vector.multi_reduction <add>, %87, %cst_43 [1] : vector<16x16xf32> to vector<16xf32>
    %89 = vector.shape_cast %88 : vector<16xf32> to vector<16x1xf32>
    %90 = tpu.reciprocal %89 {approx = true} : vector<16x1xf32> -> vector<16x1xf32>
    %91 = vector.broadcast %90 : vector<16x1xf32> to vector<16x16xf32>
    %92 = arith.mulf %87, %91 : vector<16x16xf32>
    %cst_44 = arith.constant dense<0.000000e+00> : vector<8x16xf32>
    %93 = tpu.matmul %78, %92, %cst_44 {dimension_numbers = #tpu.dot_dimension_numbers<[1], [1], [0], [0], [0, 0, 1, 0], [], []>} : vector<8x16xf32>, vector<16x16xf32>, vector<8x16xf32> -> vector<8x16xf32>
    %c2_45 = arith.constant 2 : index
    %c0_46 = arith.constant 0 : index
    %c0_47 = arith.constant 0 : index
    %94 = vector.load %arg4[%c2_45, %c0_46, %c0_47] : memref<8x32x8xf32, #tpu.memory_space<vmem>>, vector<1x32x8xf32>
    %95 = vector.shape_cast %94 : vector<1x32x8xf32> to vector<32x8xf32>
    %cst_48 = arith.constant dense<0.000000e+00> : vector<32x16xf32>
    %96 = tpu.matmul %95, %93, %cst_48 {dimension_numbers = #tpu.dot_dimension_numbers<[1], [0], [0], [1], [0, 0, 1, 1], [], []>} : vector<32x8xf32>, vector<8x16xf32>, vector<32x16xf32> -> vector<32x16xf32>
    %97 = arith.addf %75, %96 : vector<32x16xf32>
    %98 = vector.extract_strided_slice %30 {offsets = [24, 0], sizes = [8, 16], strides = [1, 1]} : vector<96x16xf32> to vector<8x16xf32>
    %99 = vector.extract_strided_slice %30 {offsets = [56, 0], sizes = [8, 16], strides = [1, 1]} : vector<96x16xf32> to vector<8x16xf32>
    %100 = vector.extract_strided_slice %30 {offsets = [88, 0], sizes = [8, 16], strides = [1, 1]} : vector<96x16xf32> to vector<8x16xf32>
    %cst_49 = arith.constant dense<0.000000e+00> : vector<16x16xf32>
    %101 = tpu.matmul %98, %99, %cst_49 {dimension_numbers = #tpu.dot_dimension_numbers<[0], [0], [1], [1], [0, 1, 1, 1], [], []>} : vector<8x16xf32>, vector<8x16xf32>, vector<16x16xf32> -> vector<16x16xf32>
    %c0_50 = arith.constant 0 : index
    %c3 = arith.constant 3 : index
    %c0_51 = arith.constant 0 : index
    %c0_52 = arith.constant 0 : index
    %102 = vector.load %arg2[%c0_50, %c3, %c0_51, %c0_52] : memref<1x8x16x16xf32, #tpu.memory_space<vmem>>, vector<1x1x16x16xf32>
    %103 = vector.shape_cast %102 : vector<1x1x16x16xf32> to vector<16x16xf32>
    %104 = arith.addf %101, %103 : vector<16x16xf32>
    %cst_53 = arith.constant dense<0xFF800000> : vector<16xf32>
    %105 = vector.multi_reduction <maximumf>, %104, %cst_53 [1] : vector<16x16xf32> to vector<16xf32>
    %106 = vector.shape_cast %105 : vector<16xf32> to vector<16x1xf32>
    %107 = vector.broadcast %106 : vector<16x1xf32> to vector<16x16xf32>
    %108 = arith.subf %104, %107 : vector<16x16xf32>
    %109 = math.exp %108 : vector<16x16xf32>
    %cst_54 = arith.constant dense<0.000000e+00> : vector<16xf32>
    %110 = vector.multi_reduction <add>, %109, %cst_54 [1] : vector<16x16xf32> to vector<16xf32>
    %111 = vector.shape_cast %110 : vector<16xf32> to vector<16x1xf32>
    %112 = tpu.reciprocal %111 {approx = true} : vector<16x1xf32> -> vector<16x1xf32>
    %113 = vector.broadcast %112 : vector<16x1xf32> to vector<16x16xf32>
    %114 = arith.mulf %109, %113 : vector<16x16xf32>
    %cst_55 = arith.constant dense<0.000000e+00> : vector<8x16xf32>
    %115 = tpu.matmul %100, %114, %cst_55 {dimension_numbers = #tpu.dot_dimension_numbers<[1], [1], [0], [0], [0, 0, 1, 0], [], []>} : vector<8x16xf32>, vector<16x16xf32>, vector<8x16xf32> -> vector<8x16xf32>
    %c3_56 = arith.constant 3 : index
    %c0_57 = arith.constant 0 : index
    %c0_58 = arith.constant 0 : index
    %116 = vector.load %arg4[%c3_56, %c0_57, %c0_58] : memref<8x32x8xf32, #tpu.memory_space<vmem>>, vector<1x32x8xf32>
    %117 = vector.shape_cast %116 : vector<1x32x8xf32> to vector<32x8xf32>
    %cst_59 = arith.constant dense<0.000000e+00> : vector<32x16xf32>
    %118 = tpu.matmul %117, %115, %cst_59 {dimension_numbers = #tpu.dot_dimension_numbers<[1], [0], [0], [1], [0, 0, 1, 1], [], []>} : vector<32x8xf32>, vector<8x16xf32>, vector<32x16xf32> -> vector<32x16xf32>
    %119 = arith.addf %97, %118 : vector<32x16xf32>
    %120 = arith.addf %1, %119 : vector<32x16xf32>
    %c0_60 = arith.constant 0 : index
    %c2_61 = arith.constant 2 : index
    %121 = vector.load %arg7[%c0_60, %c2_61] : memref<96x18xf32, #tpu.memory_space<vmem>>, vector<32x1xf32>
    %122 = vector.broadcast %121 : vector<32x1xf32> to vector<32x16xf32>
    %123 = arith.addf %120, %122 : vector<32x16xf32>
    %c0_62 = arith.constant 0 : index
    %c6 = arith.constant 6 : index
    %124 = vector.load %arg7[%c0_62, %c6] : memref<96x18xf32, #tpu.memory_space<vmem>>, vector<32x1xf32>
    %c0_63 = arith.constant 0 : index
    %c7 = arith.constant 7 : index
    %125 = vector.load %arg7[%c0_63, %c7] : memref<96x18xf32, #tpu.memory_space<vmem>>, vector<32x1xf32>
    %cst_64 = arith.constant dense<0.000000e+00> : vector<16xf32>
    %126 = vector.multi_reduction <add>, %123, %cst_64 [0] : vector<32x16xf32> to vector<16xf32>
    %127 = vector.shape_cast %126 : vector<16xf32> to vector<1x16xf32>
    %cst_65 = arith.constant 3.200000e+01 : f32
    %128 = vector.broadcast %cst_65 : f32 to vector<1x16xf32>
    %129 = arith.divf %127, %128 : vector<1x16xf32>
    %130 = vector.broadcast %129 : vector<1x16xf32> to vector<32x16xf32>
    %131 = arith.subf %123, %130 : vector<32x16xf32>
    %132 = arith.mulf %131, %131 : vector<32x16xf32>
    %cst_66 = arith.constant dense<0.000000e+00> : vector<16xf32>
    %133 = vector.multi_reduction <add>, %132, %cst_66 [0] : vector<32x16xf32> to vector<16xf32>
    %134 = vector.shape_cast %133 : vector<16xf32> to vector<1x16xf32>
    %cst_67 = arith.constant 0.0322580636 : f32
    %135 = vector.broadcast %cst_67 : f32 to vector<1x16xf32>
    %136 = arith.mulf %134, %135 : vector<1x16xf32>
    %137 = math.sqrt %136 : vector<1x16xf32>
    %cst_68 = arith.constant 9.99999997E-7 : f32
    %138 = vector.broadcast %cst_68 : f32 to vector<1x16xf32>
    %139 = arith.addf %137, %138 : vector<1x16xf32>
    %140 = tpu.reciprocal %139 {approx = true} : vector<1x16xf32> -> vector<1x16xf32>
    %141 = vector.broadcast %140 : vector<1x16xf32> to vector<32x16xf32>
    %142 = arith.mulf %131, %141 : vector<32x16xf32>
    %143 = vector.broadcast %124 : vector<32x1xf32> to vector<32x16xf32>
    %144 = arith.mulf %143, %142 : vector<32x16xf32>
    %145 = vector.broadcast %125 : vector<32x1xf32> to vector<32x16xf32>
    %146 = arith.addf %144, %145 : vector<32x16xf32>
    %c0_69 = arith.constant 0 : index
    %c0_70 = arith.constant 0 : index
    %c0_71 = arith.constant 0 : index
    %147 = vector.load %arg5[%c0_69, %c0_70, %c0_71] : memref<2x64x32xf32, #tpu.memory_space<vmem>>, vector<1x64x32xf32>
    %148 = vector.shape_cast %147 : vector<1x64x32xf32> to vector<64x32xf32>
    %cst_72 = arith.constant dense<0.000000e+00> : vector<64x16xf32>
    %149 = tpu.matmul %148, %146, %cst_72 {dimension_numbers = #tpu.dot_dimension_numbers<[1], [0], [0], [1], [0, 0, 1, 1], [], []>} : vector<64x32xf32>, vector<32x16xf32>, vector<64x16xf32> -> vector<64x16xf32>
    %c0_73 = arith.constant 0 : index
    %c1_74 = arith.constant 1 : index
    %150 = vector.load %arg7[%c0_73, %c1_74] : memref<96x18xf32, #tpu.memory_space<vmem>>, vector<64x1xf32>
    %151 = vector.broadcast %150 : vector<64x1xf32> to vector<64x16xf32>
    %152 = arith.addf %149, %151 : vector<64x16xf32>
    %cst_75 = arith.constant 0.000000e+00 : f32
    %153 = vector.broadcast %cst_75 : f32 to vector<64x16xf32>
    %154 = arith.maximumf %152, %153 : vector<64x16xf32>
    %c0_76 = arith.constant 0 : index
    %c0_77 = arith.constant 0 : index
    %c0_78 = arith.constant 0 : index
    %155 = vector.load %arg6[%c0_76, %c0_77, %c0_78] : memref<2x32x64xf32, #tpu.memory_space<vmem>>, vector<1x32x64xf32>
    %156 = vector.shape_cast %155 : vector<1x32x64xf32> to vector<32x64xf32>
    %cst_79 = arith.constant dense<0.000000e+00> : vector<32x16xf32>
    %157 = tpu.matmul %156, %154, %cst_79 {dimension_numbers = #tpu.dot_dimension_numbers<[1], [0], [0], [1], [0, 0, 1, 1], [], []>} : vector<32x64xf32>, vector<64x16xf32>, vector<32x16xf32> -> vector<32x16xf32>
    %158 = arith.addf %123, %157 : vector<32x16xf32>
    %c0_80 = arith.constant 0 : index
    %c3_81 = arith.constant 3 : index
    %159 = vector.load %arg7[%c0_80, %c3_81] : memref<96x18xf32, #tpu.memory_space<vmem>>, vector<32x1xf32>
    %160 = vector.broadcast %159 : vector<32x1xf32> to vector<32x16xf32>
    %161 = arith.addf %158, %160 : vector<32x16xf32>
    %c0_82 = arith.constant 0 : index
    %c12 = arith.constant 12 : index
    %162 = vector.load %arg7[%c0_82, %c12] : memref<96x18xf32, #tpu.memory_space<vmem>>, vector<32x1xf32>
    %c0_83 = arith.constant 0 : index
    %c13 = arith.constant 13 : index
    %163 = vector.load %arg7[%c0_83, %c13] : memref<96x18xf32, #tpu.memory_space<vmem>>, vector<32x1xf32>
    %cst_84 = arith.constant dense<0.000000e+00> : vector<16xf32>
    %164 = vector.multi_reduction <add>, %161, %cst_84 [0] : vector<32x16xf32> to vector<16xf32>
    %165 = vector.shape_cast %164 : vector<16xf32> to vector<1x16xf32>
    %cst_85 = arith.constant 3.200000e+01 : f32
    %166 = vector.broadcast %cst_85 : f32 to vector<1x16xf32>
    %167 = arith.divf %165, %166 : vector<1x16xf32>
    %168 = vector.broadcast %167 : vector<1x16xf32> to vector<32x16xf32>
    %169 = arith.subf %161, %168 : vector<32x16xf32>
    %170 = arith.mulf %169, %169 : vector<32x16xf32>
    %cst_86 = arith.constant dense<0.000000e+00> : vector<16xf32>
    %171 = vector.multi_reduction <add>, %170, %cst_86 [0] : vector<32x16xf32> to vector<16xf32>
    %172 = vector.shape_cast %171 : vector<16xf32> to vector<1x16xf32>
    %cst_87 = arith.constant 0.0322580636 : f32
    %173 = vector.broadcast %cst_87 : f32 to vector<1x16xf32>
    %174 = arith.mulf %172, %173 : vector<1x16xf32>
    %175 = math.sqrt %174 : vector<1x16xf32>
    %cst_88 = arith.constant 9.99999997E-7 : f32
    %176 = vector.broadcast %cst_88 : f32 to vector<1x16xf32>
    %177 = arith.addf %175, %176 : vector<1x16xf32>
    %178 = tpu.reciprocal %177 {approx = true} : vector<1x16xf32> -> vector<1x16xf32>
    %179 = vector.broadcast %178 : vector<1x16xf32> to vector<32x16xf32>
    %180 = arith.mulf %169, %179 : vector<32x16xf32>
    %181 = vector.broadcast %162 : vector<32x1xf32> to vector<32x16xf32>
    %182 = arith.mulf %181, %180 : vector<32x16xf32>
    %183 = vector.broadcast %163 : vector<32x1xf32> to vector<32x16xf32>
    %184 = arith.addf %182, %183 : vector<32x16xf32>
    %c1_89 = arith.constant 1 : index
    %c0_90 = arith.constant 0 : index
    %c0_91 = arith.constant 0 : index
    %185 = vector.load %arg3[%c1_89, %c0_90, %c0_91] : memref<2x96x32xf32, #tpu.memory_space<vmem>>, vector<1x96x32xf32>
    %186 = vector.shape_cast %185 : vector<1x96x32xf32> to vector<96x32xf32>
    %cst_92 = arith.constant dense<0.000000e+00> : vector<96x16xf32>
    %187 = tpu.matmul %186, %184, %cst_92 {dimension_numbers = #tpu.dot_dimension_numbers<[1], [0], [0], [1], [0, 0, 1, 1], [], []>} : vector<96x32xf32>, vector<32x16xf32>, vector<96x16xf32> -> vector<96x16xf32>
    %c0_93 = arith.constant 0 : index
    %c8 = arith.constant 8 : index
    %188 = vector.load %arg7[%c0_93, %c8] : memref<96x18xf32, #tpu.memory_space<vmem>>, vector<96x1xf32>
    %189 = vector.broadcast %188 : vector<96x1xf32> to vector<96x16xf32>
    %190 = arith.addf %187, %189 : vector<96x16xf32>
    %cst_94 = arith.constant 0.000000e+00 : f32
    %191 = vector.broadcast %cst_94 : f32 to vector<32x16xf32>
    %192 = vector.extract_strided_slice %190 {offsets = [0, 0], sizes = [8, 16], strides = [1, 1]} : vector<96x16xf32> to vector<8x16xf32>
    %193 = vector.extract_strided_slice %190 {offsets = [32, 0], sizes = [8, 16], strides = [1, 1]} : vector<96x16xf32> to vector<8x16xf32>
    %194 = vector.extract_strided_slice %190 {offsets = [64, 0], sizes = [8, 16], strides = [1, 1]} : vector<96x16xf32> to vector<8x16xf32>
    %cst_95 = arith.constant dense<0.000000e+00> : vector<16x16xf32>
    %195 = tpu.matmul %192, %193, %cst_95 {dimension_numbers = #tpu.dot_dimension_numbers<[0], [0], [1], [1], [0, 1, 1, 1], [], []>} : vector<8x16xf32>, vector<8x16xf32>, vector<16x16xf32> -> vector<16x16xf32>
    %c0_96 = arith.constant 0 : index
    %c4_97 = arith.constant 4 : index
    %c0_98 = arith.constant 0 : index
    %c0_99 = arith.constant 0 : index
    %196 = vector.load %arg2[%c0_96, %c4_97, %c0_98, %c0_99] : memref<1x8x16x16xf32, #tpu.memory_space<vmem>>, vector<1x1x16x16xf32>
    %197 = vector.shape_cast %196 : vector<1x1x16x16xf32> to vector<16x16xf32>
    %198 = arith.addf %195, %197 : vector<16x16xf32>
    %cst_100 = arith.constant dense<0xFF800000> : vector<16xf32>
    %199 = vector.multi_reduction <maximumf>, %198, %cst_100 [1] : vector<16x16xf32> to vector<16xf32>
    %200 = vector.shape_cast %199 : vector<16xf32> to vector<16x1xf32>
    %201 = vector.broadcast %200 : vector<16x1xf32> to vector<16x16xf32>
    %202 = arith.subf %198, %201 : vector<16x16xf32>
    %203 = math.exp %202 : vector<16x16xf32>
    %cst_101 = arith.constant dense<0.000000e+00> : vector<16xf32>
    %204 = vector.multi_reduction <add>, %203, %cst_101 [1] : vector<16x16xf32> to vector<16xf32>
    %205 = vector.shape_cast %204 : vector<16xf32> to vector<16x1xf32>
    %206 = tpu.reciprocal %205 {approx = true} : vector<16x1xf32> -> vector<16x1xf32>
    %207 = vector.broadcast %206 : vector<16x1xf32> to vector<16x16xf32>
    %208 = arith.mulf %203, %207 : vector<16x16xf32>
    %cst_102 = arith.constant dense<0.000000e+00> : vector<8x16xf32>
    %209 = tpu.matmul %194, %208, %cst_102 {dimension_numbers = #tpu.dot_dimension_numbers<[1], [1], [0], [0], [0, 0, 1, 0], [], []>} : vector<8x16xf32>, vector<16x16xf32>, vector<8x16xf32> -> vector<8x16xf32>
    %c4_103 = arith.constant 4 : index
    %c0_104 = arith.constant 0 : index
    %c0_105 = arith.constant 0 : index
    %210 = vector.load %arg4[%c4_103, %c0_104, %c0_105] : memref<8x32x8xf32, #tpu.memory_space<vmem>>, vector<1x32x8xf32>
    %211 = vector.shape_cast %210 : vector<1x32x8xf32> to vector<32x8xf32>
    %cst_106 = arith.constant dense<0.000000e+00> : vector<32x16xf32>
    %212 = tpu.matmul %211, %209, %cst_106 {dimension_numbers = #tpu.dot_dimension_numbers<[1], [0], [0], [1], [0, 0, 1, 1], [], []>} : vector<32x8xf32>, vector<8x16xf32>, vector<32x16xf32> -> vector<32x16xf32>
    %213 = arith.addf %191, %212 : vector<32x16xf32>
    %214 = vector.extract_strided_slice %190 {offsets = [8, 0], sizes = [8, 16], strides = [1, 1]} : vector<96x16xf32> to vector<8x16xf32>
    %215 = vector.extract_strided_slice %190 {offsets = [40, 0], sizes = [8, 16], strides = [1, 1]} : vector<96x16xf32> to vector<8x16xf32>
    %216 = vector.extract_strided_slice %190 {offsets = [72, 0], sizes = [8, 16], strides = [1, 1]} : vector<96x16xf32> to vector<8x16xf32>
    %cst_107 = arith.constant dense<0.000000e+00> : vector<16x16xf32>
    %217 = tpu.matmul %214, %215, %cst_107 {dimension_numbers = #tpu.dot_dimension_numbers<[0], [0], [1], [1], [0, 1, 1, 1], [], []>} : vector<8x16xf32>, vector<8x16xf32>, vector<16x16xf32> -> vector<16x16xf32>
    %c0_108 = arith.constant 0 : index
    %c5_109 = arith.constant 5 : index
    %c0_110 = arith.constant 0 : index
    %c0_111 = arith.constant 0 : index
    %218 = vector.load %arg2[%c0_108, %c5_109, %c0_110, %c0_111] : memref<1x8x16x16xf32, #tpu.memory_space<vmem>>, vector<1x1x16x16xf32>
    %219 = vector.shape_cast %218 : vector<1x1x16x16xf32> to vector<16x16xf32>
    %220 = arith.addf %217, %219 : vector<16x16xf32>
    %cst_112 = arith.constant dense<0xFF800000> : vector<16xf32>
    %221 = vector.multi_reduction <maximumf>, %220, %cst_112 [1] : vector<16x16xf32> to vector<16xf32>
    %222 = vector.shape_cast %221 : vector<16xf32> to vector<16x1xf32>
    %223 = vector.broadcast %222 : vector<16x1xf32> to vector<16x16xf32>
    %224 = arith.subf %220, %223 : vector<16x16xf32>
    %225 = math.exp %224 : vector<16x16xf32>
    %cst_113 = arith.constant dense<0.000000e+00> : vector<16xf32>
    %226 = vector.multi_reduction <add>, %225, %cst_113 [1] : vector<16x16xf32> to vector<16xf32>
    %227 = vector.shape_cast %226 : vector<16xf32> to vector<16x1xf32>
    %228 = tpu.reciprocal %227 {approx = true} : vector<16x1xf32> -> vector<16x1xf32>
    %229 = vector.broadcast %228 : vector<16x1xf32> to vector<16x16xf32>
    %230 = arith.mulf %225, %229 : vector<16x16xf32>
    %cst_114 = arith.constant dense<0.000000e+00> : vector<8x16xf32>
    %231 = tpu.matmul %216, %230, %cst_114 {dimension_numbers = #tpu.dot_dimension_numbers<[1], [1], [0], [0], [0, 0, 1, 0], [], []>} : vector<8x16xf32>, vector<16x16xf32>, vector<8x16xf32> -> vector<8x16xf32>
    %c5_115 = arith.constant 5 : index
    %c0_116 = arith.constant 0 : index
    %c0_117 = arith.constant 0 : index
    %232 = vector.load %arg4[%c5_115, %c0_116, %c0_117] : memref<8x32x8xf32, #tpu.memory_space<vmem>>, vector<1x32x8xf32>
    %233 = vector.shape_cast %232 : vector<1x32x8xf32> to vector<32x8xf32>
    %cst_118 = arith.constant dense<0.000000e+00> : vector<32x16xf32>
    %234 = tpu.matmul %233, %231, %cst_118 {dimension_numbers = #tpu.dot_dimension_numbers<[1], [0], [0], [1], [0, 0, 1, 1], [], []>} : vector<32x8xf32>, vector<8x16xf32>, vector<32x16xf32> -> vector<32x16xf32>
    %235 = arith.addf %213, %234 : vector<32x16xf32>
    %236 = vector.extract_strided_slice %190 {offsets = [16, 0], sizes = [8, 16], strides = [1, 1]} : vector<96x16xf32> to vector<8x16xf32>
    %237 = vector.extract_strided_slice %190 {offsets = [48, 0], sizes = [8, 16], strides = [1, 1]} : vector<96x16xf32> to vector<8x16xf32>
    %238 = vector.extract_strided_slice %190 {offsets = [80, 0], sizes = [8, 16], strides = [1, 1]} : vector<96x16xf32> to vector<8x16xf32>
    %cst_119 = arith.constant dense<0.000000e+00> : vector<16x16xf32>
    %239 = tpu.matmul %236, %237, %cst_119 {dimension_numbers = #tpu.dot_dimension_numbers<[0], [0], [1], [1], [0, 1, 1, 1], [], []>} : vector<8x16xf32>, vector<8x16xf32>, vector<16x16xf32> -> vector<16x16xf32>
    %c0_120 = arith.constant 0 : index
    %c6_121 = arith.constant 6 : index
    %c0_122 = arith.constant 0 : index
    %c0_123 = arith.constant 0 : index
    %240 = vector.load %arg2[%c0_120, %c6_121, %c0_122, %c0_123] : memref<1x8x16x16xf32, #tpu.memory_space<vmem>>, vector<1x1x16x16xf32>
    %241 = vector.shape_cast %240 : vector<1x1x16x16xf32> to vector<16x16xf32>
    %242 = arith.addf %239, %241 : vector<16x16xf32>
    %cst_124 = arith.constant dense<0xFF800000> : vector<16xf32>
    %243 = vector.multi_reduction <maximumf>, %242, %cst_124 [1] : vector<16x16xf32> to vector<16xf32>
    %244 = vector.shape_cast %243 : vector<16xf32> to vector<16x1xf32>
    %245 = vector.broadcast %244 : vector<16x1xf32> to vector<16x16xf32>
    %246 = arith.subf %242, %245 : vector<16x16xf32>
    %247 = math.exp %246 : vector<16x16xf32>
    %cst_125 = arith.constant dense<0.000000e+00> : vector<16xf32>
    %248 = vector.multi_reduction <add>, %247, %cst_125 [1] : vector<16x16xf32> to vector<16xf32>
    %249 = vector.shape_cast %248 : vector<16xf32> to vector<16x1xf32>
    %250 = tpu.reciprocal %249 {approx = true} : vector<16x1xf32> -> vector<16x1xf32>
    %251 = vector.broadcast %250 : vector<16x1xf32> to vector<16x16xf32>
    %252 = arith.mulf %247, %251 : vector<16x16xf32>
    %cst_126 = arith.constant dense<0.000000e+00> : vector<8x16xf32>
    %253 = tpu.matmul %238, %252, %cst_126 {dimension_numbers = #tpu.dot_dimension_numbers<[1], [1], [0], [0], [0, 0, 1, 0], [], []>} : vector<8x16xf32>, vector<16x16xf32>, vector<8x16xf32> -> vector<8x16xf32>
    %c6_127 = arith.constant 6 : index
    %c0_128 = arith.constant 0 : index
    %c0_129 = arith.constant 0 : index
    %254 = vector.load %arg4[%c6_127, %c0_128, %c0_129] : memref<8x32x8xf32, #tpu.memory_space<vmem>>, vector<1x32x8xf32>
    %255 = vector.shape_cast %254 : vector<1x32x8xf32> to vector<32x8xf32>
    %cst_130 = arith.constant dense<0.000000e+00> : vector<32x16xf32>
    %256 = tpu.matmul %255, %253, %cst_130 {dimension_numbers = #tpu.dot_dimension_numbers<[1], [0], [0], [1], [0, 0, 1, 1], [], []>} : vector<32x8xf32>, vector<8x16xf32>, vector<32x16xf32> -> vector<32x16xf32>
    %257 = arith.addf %235, %256 : vector<32x16xf32>
    %258 = vector.extract_strided_slice %190 {offsets = [24, 0], sizes = [8, 16], strides = [1, 1]} : vector<96x16xf32> to vector<8x16xf32>
    %259 = vector.extract_strided_slice %190 {offsets = [56, 0], sizes = [8, 16], strides = [1, 1]} : vector<96x16xf32> to vector<8x16xf32>
    %260 = vector.extract_strided_slice %190 {offsets = [88, 0], sizes = [8, 16], strides = [1, 1]} : vector<96x16xf32> to vector<8x16xf32>
    %cst_131 = arith.constant dense<0.000000e+00> : vector<16x16xf32>
    %261 = tpu.matmul %258, %259, %cst_131 {dimension_numbers = #tpu.dot_dimension_numbers<[0], [0], [1], [1], [0, 1, 1, 1], [], []>} : vector<8x16xf32>, vector<8x16xf32>, vector<16x16xf32> -> vector<16x16xf32>
    %c0_132 = arith.constant 0 : index
    %c7_133 = arith.constant 7 : index
    %c0_134 = arith.constant 0 : index
    %c0_135 = arith.constant 0 : index
    %262 = vector.load %arg2[%c0_132, %c7_133, %c0_134, %c0_135] : memref<1x8x16x16xf32, #tpu.memory_space<vmem>>, vector<1x1x16x16xf32>
    %263 = vector.shape_cast %262 : vector<1x1x16x16xf32> to vector<16x16xf32>
    %264 = arith.addf %261, %263 : vector<16x16xf32>
    %cst_136 = arith.constant dense<0xFF800000> : vector<16xf32>
    %265 = vector.multi_reduction <maximumf>, %264, %cst_136 [1] : vector<16x16xf32> to vector<16xf32>
    %266 = vector.shape_cast %265 : vector<16xf32> to vector<16x1xf32>
    %267 = vector.broadcast %266 : vector<16x1xf32> to vector<16x16xf32>
    %268 = arith.subf %264, %267 : vector<16x16xf32>
    %269 = math.exp %268 : vector<16x16xf32>
    %cst_137 = arith.constant dense<0.000000e+00> : vector<16xf32>
    %270 = vector.multi_reduction <add>, %269, %cst_137 [1] : vector<16x16xf32> to vector<16xf32>
    %271 = vector.shape_cast %270 : vector<16xf32> to vector<16x1xf32>
    %272 = tpu.reciprocal %271 {approx = true} : vector<16x1xf32> -> vector<16x1xf32>
    %273 = vector.broadcast %272 : vector<16x1xf32> to vector<16x16xf32>
    %274 = arith.mulf %269, %273 : vector<16x16xf32>
    %cst_138 = arith.constant dense<0.000000e+00> : vector<8x16xf32>
    %275 = tpu.matmul %260, %274, %cst_138 {dimension_numbers = #tpu.dot_dimension_numbers<[1], [1], [0], [0], [0, 0, 1, 0], [], []>} : vector<8x16xf32>, vector<16x16xf32>, vector<8x16xf32> -> vector<8x16xf32>
    %c7_139 = arith.constant 7 : index
    %c0_140 = arith.constant 0 : index
    %c0_141 = arith.constant 0 : index
    %276 = vector.load %arg4[%c7_139, %c0_140, %c0_141] : memref<8x32x8xf32, #tpu.memory_space<vmem>>, vector<1x32x8xf32>
    %277 = vector.shape_cast %276 : vector<1x32x8xf32> to vector<32x8xf32>
    %cst_142 = arith.constant dense<0.000000e+00> : vector<32x16xf32>
    %278 = tpu.matmul %277, %275, %cst_142 {dimension_numbers = #tpu.dot_dimension_numbers<[1], [0], [0], [1], [0, 0, 1, 1], [], []>} : vector<32x8xf32>, vector<8x16xf32>, vector<32x16xf32> -> vector<32x16xf32>
    %279 = arith.addf %257, %278 : vector<32x16xf32>
    %280 = arith.addf %161, %279 : vector<32x16xf32>
    %c0_143 = arith.constant 0 : index
    %c10 = arith.constant 10 : index
    %281 = vector.load %arg7[%c0_143, %c10] : memref<96x18xf32, #tpu.memory_space<vmem>>, vector<32x1xf32>
    %282 = vector.broadcast %281 : vector<32x1xf32> to vector<32x16xf32>
    %283 = arith.addf %280, %282 : vector<32x16xf32>
    %c0_144 = arith.constant 0 : index
    %c14 = arith.constant 14 : index
    %284 = vector.load %arg7[%c0_144, %c14] : memref<96x18xf32, #tpu.memory_space<vmem>>, vector<32x1xf32>
    %c0_145 = arith.constant 0 : index
    %c15 = arith.constant 15 : index
    %285 = vector.load %arg7[%c0_145, %c15] : memref<96x18xf32, #tpu.memory_space<vmem>>, vector<32x1xf32>
    %cst_146 = arith.constant dense<0.000000e+00> : vector<16xf32>
    %286 = vector.multi_reduction <add>, %283, %cst_146 [0] : vector<32x16xf32> to vector<16xf32>
    %287 = vector.shape_cast %286 : vector<16xf32> to vector<1x16xf32>
    %cst_147 = arith.constant 3.200000e+01 : f32
    %288 = vector.broadcast %cst_147 : f32 to vector<1x16xf32>
    %289 = arith.divf %287, %288 : vector<1x16xf32>
    %290 = vector.broadcast %289 : vector<1x16xf32> to vector<32x16xf32>
    %291 = arith.subf %283, %290 : vector<32x16xf32>
    %292 = arith.mulf %291, %291 : vector<32x16xf32>
    %cst_148 = arith.constant dense<0.000000e+00> : vector<16xf32>
    %293 = vector.multi_reduction <add>, %292, %cst_148 [0] : vector<32x16xf32> to vector<16xf32>
    %294 = vector.shape_cast %293 : vector<16xf32> to vector<1x16xf32>
    %cst_149 = arith.constant 0.0322580636 : f32
    %295 = vector.broadcast %cst_149 : f32 to vector<1x16xf32>
    %296 = arith.mulf %294, %295 : vector<1x16xf32>
    %297 = math.sqrt %296 : vector<1x16xf32>
    %cst_150 = arith.constant 9.99999997E-7 : f32
    %298 = vector.broadcast %cst_150 : f32 to vector<1x16xf32>
    %299 = arith.addf %297, %298 : vector<1x16xf32>
    %300 = tpu.reciprocal %299 {approx = true} : vector<1x16xf32> -> vector<1x16xf32>
    %301 = vector.broadcast %300 : vector<1x16xf32> to vector<32x16xf32>
    %302 = arith.mulf %291, %301 : vector<32x16xf32>
    %303 = vector.broadcast %284 : vector<32x1xf32> to vector<32x16xf32>
    %304 = arith.mulf %303, %302 : vector<32x16xf32>
    %305 = vector.broadcast %285 : vector<32x1xf32> to vector<32x16xf32>
    %306 = arith.addf %304, %305 : vector<32x16xf32>
    %c1_151 = arith.constant 1 : index
    %c0_152 = arith.constant 0 : index
    %c0_153 = arith.constant 0 : index
    %307 = vector.load %arg5[%c1_151, %c0_152, %c0_153] : memref<2x64x32xf32, #tpu.memory_space<vmem>>, vector<1x64x32xf32>
    %308 = vector.shape_cast %307 : vector<1x64x32xf32> to vector<64x32xf32>
    %cst_154 = arith.constant dense<0.000000e+00> : vector<64x16xf32>
    %309 = tpu.matmul %308, %306, %cst_154 {dimension_numbers = #tpu.dot_dimension_numbers<[1], [0], [0], [1], [0, 0, 1, 1], [], []>} : vector<64x32xf32>, vector<32x16xf32>, vector<64x16xf32> -> vector<64x16xf32>
    %c0_155 = arith.constant 0 : index
    %c9 = arith.constant 9 : index
    %310 = vector.load %arg7[%c0_155, %c9] : memref<96x18xf32, #tpu.memory_space<vmem>>, vector<64x1xf32>
    %311 = vector.broadcast %310 : vector<64x1xf32> to vector<64x16xf32>
    %312 = arith.addf %309, %311 : vector<64x16xf32>
    %cst_156 = arith.constant 0.000000e+00 : f32
    %313 = vector.broadcast %cst_156 : f32 to vector<64x16xf32>
    %314 = arith.maximumf %312, %313 : vector<64x16xf32>
    %c1_157 = arith.constant 1 : index
    %c0_158 = arith.constant 0 : index
    %c0_159 = arith.constant 0 : index
    %315 = vector.load %arg6[%c1_157, %c0_158, %c0_159] : memref<2x32x64xf32, #tpu.memory_space<vmem>>, vector<1x32x64xf32>
    %316 = vector.shape_cast %315 : vector<1x32x64xf32> to vector<32x64xf32>
    %cst_160 = arith.constant dense<0.000000e+00> : vector<32x16xf32>
    %317 = tpu.matmul %316, %314, %cst_160 {dimension_numbers = #tpu.dot_dimension_numbers<[1], [0], [0], [1], [0, 0, 1, 1], [], []>} : vector<32x64xf32>, vector<64x16xf32>, vector<32x16xf32> -> vector<32x16xf32>
    %318 = arith.addf %283, %317 : vector<32x16xf32>
    %c0_161 = arith.constant 0 : index
    %c11 = arith.constant 11 : index
    %319 = vector.load %arg7[%c0_161, %c11] : memref<96x18xf32, #tpu.memory_space<vmem>>, vector<32x1xf32>
    %320 = vector.broadcast %319 : vector<32x1xf32> to vector<32x16xf32>
    %321 = arith.addf %318, %320 : vector<32x16xf32>
    %c0_162 = arith.constant 0 : index
    %c16 = arith.constant 16 : index
    %322 = vector.load %arg7[%c0_162, %c16] : memref<96x18xf32, #tpu.memory_space<vmem>>, vector<32x1xf32>
    %c0_163 = arith.constant 0 : index
    %c17 = arith.constant 17 : index
    %323 = vector.load %arg7[%c0_163, %c17] : memref<96x18xf32, #tpu.memory_space<vmem>>, vector<32x1xf32>
    %cst_164 = arith.constant dense<0.000000e+00> : vector<16xf32>
    %324 = vector.multi_reduction <add>, %321, %cst_164 [0] : vector<32x16xf32> to vector<16xf32>
    %325 = vector.shape_cast %324 : vector<16xf32> to vector<1x16xf32>
    %cst_165 = arith.constant 3.200000e+01 : f32
    %326 = vector.broadcast %cst_165 : f32 to vector<1x16xf32>
    %327 = arith.divf %325, %326 : vector<1x16xf32>
    %328 = vector.broadcast %327 : vector<1x16xf32> to vector<32x16xf32>
    %329 = arith.subf %321, %328 : vector<32x16xf32>
    %330 = arith.mulf %329, %329 : vector<32x16xf32>
    %cst_166 = arith.constant dense<0.000000e+00> : vector<16xf32>
    %331 = vector.multi_reduction <add>, %330, %cst_166 [0] : vector<32x16xf32> to vector<16xf32>
    %332 = vector.shape_cast %331 : vector<16xf32> to vector<1x16xf32>
    %cst_167 = arith.constant 0.0322580636 : f32
    %333 = vector.broadcast %cst_167 : f32 to vector<1x16xf32>
    %334 = arith.mulf %332, %333 : vector<1x16xf32>
    %335 = math.sqrt %334 : vector<1x16xf32>
    %cst_168 = arith.constant 9.99999997E-7 : f32
    %336 = vector.broadcast %cst_168 : f32 to vector<1x16xf32>
    %337 = arith.addf %335, %336 : vector<1x16xf32>
    %338 = tpu.reciprocal %337 {approx = true} : vector<1x16xf32> -> vector<1x16xf32>
    %339 = vector.broadcast %338 : vector<1x16xf32> to vector<32x16xf32>
    %340 = arith.mulf %329, %339 : vector<32x16xf32>
    %341 = vector.broadcast %322 : vector<32x1xf32> to vector<32x16xf32>
    %342 = arith.mulf %341, %340 : vector<32x16xf32>
    %343 = vector.broadcast %323 : vector<32x1xf32> to vector<32x16xf32>
    %344 = arith.addf %342, %343 : vector<32x16xf32>
    %c0_169 = arith.constant 0 : index
    %c0_170 = arith.constant 0 : index
    %c0_171 = arith.constant 0 : index
    %345 = vector.load %arg8[%c0_169, %c0_170, %c0_171] : memref<1x32x16xf32, #tpu.memory_space<vmem>>, vector<1x32x16xf32>
    %346 = vector.shape_cast %345 : vector<1x32x16xf32> to vector<32x16xf32>
    %347 = vector.shape_cast %344 : vector<32x16xf32> to vector<1x32x16xf32>
    tpu.vector_store %arg8[%c0_169, %c0_170, %c0_171], %347 {strides = array<i32>} : memref<1x32x16xf32, #tpu.memory_space<vmem>>, vector<1x32x16xf32>,
    return
  }
  func.func @transform_0(%arg0: i32) -> (i32, i32, i32) {
    %c0_i32 = arith.constant 0 : i32
    %c0_i32_0 = arith.constant 0 : i32
    %c0_i32_1 = arith.constant 0 : i32
    return %arg0, %c0_i32, %c0_i32_0 : i32, i32, i32
  }
  func.func @transform_1(%arg0: i32) -> (i32, i32, i32, i32) {
    %c0_i32 = arith.constant 0 : i32
    %c0_i32_0 = arith.constant 0 : i32
    %c0_i32_1 = arith.constant 0 : i32
    %c0_i32_2 = arith.constant 0 : i32
    return %arg0, %c0_i32, %c0_i32_0, %c0_i32_1 : i32, i32, i32, i32
  }
  func.func @transform_2(%arg0: i32) -> (i32, i32, i32) {
    %c0_i32 = arith.constant 0 : i32
    %c0_i32_0 = arith.constant 0 : i32
    %c0_i32_1 = arith.constant 0 : i32
    %c0_i32_2 = arith.constant 0 : i32
    return %c0_i32, %c0_i32_0, %c0_i32_1 : i32, i32, i32
  }
  func.func @transform_3(%arg0: i32) -> (i32, i32, i32) {
    %c0_i32 = arith.constant 0 : i32
    %c0_i32_0 = arith.constant 0 : i32
    %c0_i32_1 = arith.constant 0 : i32
    %c0_i32_2 = arith.constant 0 : i32
    return %c0_i32, %c0_i32_0, %c0_i32_1 : i32, i32, i32
  }
  func.func @transform_4(%arg0: i32) -> (i32, i32, i32) {
    %c0_i32 = arith.constant 0 : i32
    %c0_i32_0 = arith.constant 0 : i32
    %c0_i32_1 = arith.constant 0 : i32
    %c0_i32_2 = arith.constant 0 : i32
    return %c0_i32, %c0_i32_0, %c0_i32_1 : i32, i32, i32
  }
  func.func @transform_5(%arg0: i32) -> (i32, i32, i32) {
    %c0_i32 = arith.constant 0 : i32
    %c0_i32_0 = arith.constant 0 : i32
    %c0_i32_1 = arith.constant 0 : i32
    %c0_i32_2 = arith.constant 0 : i32
    return %c0_i32, %c0_i32_0, %c0_i32_1 : i32, i32, i32
  }
  func.func @transform_6(%arg0: i32) -> (i32, i32) {
    %c0_i32 = arith.constant 0 : i32
    %c0_i32_0 = arith.constant 0 : i32
    %c0_i32_1 = arith.constant 0 : i32
    return %c0_i32, %c0_i32_0 : i32, i32
  }
  func.func @transform_7(%arg0: i32) -> (i32, i32, i32) {
    %c0_i32 = arith.constant 0 : i32
    %c0_i32_0 = arith.constant 0 : i32
    %c0_i32_1 = arith.constant 0 : i32
    return %arg0, %c0_i32, %c0_i32_0 : i32, i32, i32
  }
}

</mosaic_0001>

<bundles_post_ra>
// kernel: encoder_forward.1
= control target key start
LH: loop header
LB: loop body
LE: loop exit
PB: predicated region body
PF: predicated region fallthrough
CT: control target
= control target key end

     0   :  { %vm34_vm0 = vcmask 130048   ;;  %v5132_v0 = vmov 5   ;;  %v5133_v1 = vmov 4   ;;  %vm213_vm1 = vcmask 261120   ;;  %s6061_s6 = inlined_call_operand.vmem [shape: f32[96,18], index: 6, kind: input, shape index: {}]   ;;  %s6062_s0 = inlined_call_operand.vmem [shape: f32[1,32,16], index: 0, kind: input, shape index: {}]   ;;  %s6063_s2 = inlined_call_operand.vmem [shape: f32[2,96,32], index: 2, kind: input, shape index: {}]   ;;  %s6064_s1 = inlined_call_operand.vmem [shape: f32[1,8,16,16], index: 1, kind: input, shape index: {}]   ;;  %s6065_s3 = inlined_call_operand.vmem [shape: f32[8,32,8], index: 3, kind: input, shape index: {}]   ;;  %s6066_s4 = inlined_call_operand.vmem [shape: f32[2,64,32], index: 4, kind: input, shape index: {}]   ;;  %s6067_s5 = inlined_call_operand.vmem [shape: f32[2,32,64], index: 5, kind: input, shape index: {}]   ;;  %s6068_s7 = inlined_call_operand.vmem [shape: f32[1,32,16], index: 7, kind: output, shape index: {}]  }
   0x1   :  { %4991 = vset.pattern.permute.xlu1 %v5132_v0  ;;  %4990 = vset.pattern.permute.xlu0 %v5133_v1  ;;  %v5196_v2 = vld [vmem:[%s6061_s6] sm:$0xff]  ;;  %v5208_v4 = vld [vmem:[%s6062_s0 + $0x8] sm:$0xff]  ;;  %v5218_v6 = vld [vmem:[%s6062_s0 + $0x10] sm:$0xff]  ;;  %v5134_v23 = vmov 0   ;;  %vm409_vm4 = vcmask 64512   ;;  %vm5136_vm5 = vmmov 0  }
   0x2   :  { %110 = vperm.xlu1 %4991, %v5196_v2   ;;  %87 = vperm.xlu0 %4990, %v5196_v2   ;;  %v5203_v3 = vld [vmem:[%s6062_s0] sm:$0xff]  ;;  %v5213_v5 = vld [vmem:[%s6061_s6 + $0x8] sm:$0xff]  ;;  %v5223_v7 = vld [vmem:[%s6062_s0 + $0x18] sm:$0xff]  ;;  %v36_v9 = vsel %vm34_vm0, %v5208_v4, 0.0  ;;  %v38_v11 = vsel %vm34_vm0, %v5218_v6, 0.0  ;;  %vm1968_vm9 = vcmask 523264  }
   0x3   :  { %v35_v8 = vsel %vm34_vm0, %v5203_v3, 0.0  ;;  %v40_v12 = vsel %vm34_vm0, %v5223_v7, 0.0  ;;  %v5238_v14 = vld [vmem:[%s6061_s6 + $0x10] sm:$0xff]  ;;  %v5243_v15 = vld [vmem:[%s6061_s6 + $0x18] sm:$0xff]  ;;  %v129_v21 = vld [vmem:[%s6063_s2] sm:$0xff] }
   0x4   :  { %v37_v10 = vadd.f32 %v36_v9, %v35_v8  ;;  %4561 = vmatprep.mubr.msk.f32.mxu0 %vm213_vm1, %v129_v21  ;;  %v130_v21 = vld [vmem:[%s6063_s2 + $0x8] sm:$0xff]  ;;  %vm5347_vm6 = vmpackc.low %vm34_vm0, %vm34_vm0 }
   0x6   :  { %114 = vperm.xlu1 %4991, %v5213_v5   ;;  %92 = vperm.xlu0 %4990, %v5213_v5   ;;  %v39_v13 = vadd.f32 %v38_v11, %v37_v10 }
   0x8   :  { %v41_v16 = vadd.f32 %v40_v12, %v39_v13 }
   0xa   :  { %4992 = vset.pattern.permute.xlu1 %v5133_v1  ;;  %97 = vperm.xlu0 %4990, %v5238_v14   ;;  %v42_v17 = vrot.slane %v41_v16, 4 }
   0xb   :  { %102 = vperm.xlu1 %4992, %v5243_v15  }
   0xc   :  { %v43_v18 = vadd.f32 %v42_v17, %v41_v16 }
   0xe   :  { %4993 = vset.pattern.permute.xlu0 %v5132_v0  ;;  %v44_v19 = vrot.slane %v43_v18, 2 }
   0xf   :  { %4994 = vset.pattern.permute.xlu1 %v5132_v0  ;;  %118 = vperm.xlu0 %4993, %v5238_v14  }
  0x10   :  { %122 = vperm.xlu1 %4994, %v5243_v15   ;;  %v45_v20 = vadd.f32 %v44_v19, %v43_v18 }
  0x12   :  { %v46_v22 = vrot.slane %v45_v20, 1 }
  0x13   :  { %4996 = vset.pattern.permute.xlu0 %v5134_v23 }
  0x14   :  { %4995 = vset.pattern.permute.xlu1 %v5134_v23  ;;  %v47_v24 = vadd.f32 %v46_v22, %v45_v20  ;;  %v131_v22 = vld [vmem:[%s6063_s2 + $0x10] sm:$0xff]  ;;  %v132_v23 = vld [vmem:[%s6063_s2 + $0x18] sm:$0xff] }
  0x15   :  { %155 = vperm.xlu1 %4995, %v5196_v2  }
  0x16   :  { %v49_v25 = vmul.f32 0.03125, %v47_v24  ;;  %v133_v24 = vld [vmem:[%s6063_s2 + $0x20] sm:$0xff] }
  0x18   :  { %v50_v26 = vsub.f32 %v5203_v3, %v49_v25  ;;  %v51_v27 = vsub.f32 %v5208_v4, %v49_v25  ;;  %v52_v28 = vsub.f32 %v5218_v6, %v49_v25  ;;  %v53_v31 = vsub.f32 %v5223_v7, %v49_v25  ;;  %v134_v25 = vld [vmem:[%s6063_s2 + $0x28] sm:$0xff] }
  0x1a   :  { %v54_v29 = vmul.f32 %v50_v26, %v50_v26  ;;  %v55_v30 = vmul.f32 %v51_v27, %v51_v27  ;;  %v56_v32 = vmul.f32 %v52_v28, %v52_v28  ;;  %v57_v36 = vmul.f32 %v53_v31, %v53_v31 }
  0x1c   :  { %v58_v33 = vsel %vm34_vm0, %v54_v29, 0.0  ;;  %v59_v34 = vsel %vm34_vm0, %v55_v30, 0.0  ;;  %v61_v37 = vsel %vm34_vm0, %v56_v32, 0.0  ;;  %v63_v39 = vsel %vm34_vm0, %v57_v36, 0.0  ;;  %v137_v29 = vld [vmem:[%s6063_s2 + $0x40] sm:$0xff]  ;;  %v138_v30 = vld [vmem:[%s6063_s2 + $0x48] sm:$0xff] }
  0x1d   :  { %v60_v35 = vadd.f32 %v59_v34, %v58_v33 }
  0x1f   :  { %v62_v38 = vadd.f32 %v61_v37, %v60_v35 }
  0x21   :  { %v64_v40 = vadd.f32 %v63_v39, %v62_v38 }
  0x23   :  { %v65_v41 = vrot.slane %v64_v40, 4 }
  0x25   :  { %v66_v42 = vadd.f32 %v65_v41, %v64_v40 }
  0x27   :  { %v67_v43 = vrot.slane %v66_v42, 2 }
  0x29   :  { %v68_v44 = vadd.f32 %v67_v43, %v66_v42 }
  0x2b   :  { %v69_v45 = vrot.slane %v68_v44, 1 }
  0x2d   :  { %v70_v46 = vadd.f32 %v69_v45, %v68_v44 }
  0x2f   :  { %v71_v47 = vmul.f32 0.032258064, %v70_v46 }
  0x31   :  { %5028 = vrsqrt.f32 %v71_v47  ;;  %vm74_vm2 = vcmp.eq.f32.partialorder %v71_v47, inf  ;;  %v77_v50 = vand.u32 2147483648, %v71_v47  ;;  %vm76_vm3 = vcmp.eq.f32.partialorder %v71_v47, 0.0 }
  0x3b   :  { %v5029_v48 = vpop.eup %5028 }
  0x3c   :  { %v73_v49 = vmul.f32 %v5029_v48, %v71_v47  ;;  %v150_v48 = vld [vmem:[%s6061_s6 + $0x48] sm:$0xff] }
  0x3e   :  { %v75_v51 = vsel %vm74_vm2, %v71_v47, %v73_v49  ;;  %v375_v49 = vld [vmem:[%s6064_s1] sm:$0xff] }
  0x3f   :  { %v78_v52 = vsel %vm76_vm3, %v77_v50, %v75_v51  ;;  %v376_v51 = vld [vmem:[%s6064_s1 + $0x8] sm:$0xff] }
  0x40   :  { %v79_v53 = vadd.f32 1e-06, %v78_v52 }
  0x42   :  { %5030 = vrcp.f32 %v79_v53 }
  0x4c   :  { %v5031_v54 = vpop.eup %5030 }
  0x4d   :  { %v81_v55 = vmul.f32 %v5031_v54, %v50_v26  ;;  %v82_v58 = vmul.f32 %v5031_v54, %v51_v27  ;;  %v83_v8 = vmul.f32 %v5031_v54, %v52_v28  ;;  %v84_v10 = vmul.f32 %v5031_v54, %v53_v31  ;;  %v5285_v26 = vld [vmem:[%s6061_s6 + $0x20] sm:$0xff]  ;;  %v135_v27 = vld [vmem:[%s6063_s2 + $0x30] sm:$0xff]  ;;  %v136_v28 = vld [vmem:[%s6063_s2 + $0x38] sm:$0xff] }
  0x4e   :  { %175 = vperm.xlu0 %4996, %v5285_v26  }
  0x81   :  { %v111_v56 = vpop.permute.xlu1 %110  ;;  %v88_v57 = vpop.permute.xlu0 %87 }
  0x82   :  { %v105_v59 = vmul.f32 %v88_v57, %v81_v55 }
  0x84   :  { %v125_v63 = vadd.f32 %v111_v56, %v105_v59 }
  0x85   :  { %v115_v60 = vpop.permute.xlu1 %114  ;;  %v93_v61 = vpop.permute.xlu0 %92 }
  0x86   :  { %v106_v62 = vmul.f32 %v93_v61, %v82_v58  ;;  %v149_v58 = vld [vmem:[%s6061_s6 + $0x40] sm:$0xff] }
  0x88   :  { %v126_v0 = vadd.f32 %v115_v60, %v106_v62 }
  0x89   :  { %v98_v1 = vpop.permute.xlu0 %97 }
  0x8a   :  { %v103_v9 = vpop.permute.xlu1 %102  ;;  %v4849_v11 = vpack.c.bf16 %v126_v0, %v125_v63  ;;  %v107_v12 = vmul.f32 %v98_v1, %v83_v8 }
  0x8b   :  { %v108_v13 = vmul.f32 %v103_v9, %v84_v10 }
  0x8c   :  { %4850 = vmatprep.subr.bf16.mxu0 %v4849_v11 }
  0x8d   :  { %4852 = vmatpush3.bf16.msra.mxu0 %v4849_v11  ;;  %v5338_v11 = vld [vmem:[%s6061_s6 + $0x28] sm:$0xff] }
  0x8e   :  { %v119_v16 = vpop.permute.xlu0 %118 }
  0x8f   :  { %v127_v17 = vadd.f32 %v119_v16, %v107_v12  ;;  %v123_v18 = vpop.permute.xlu1 %122  ;;  %v5135_v12 = vmov 0.0|0.0  }
  0x90   :  { %v128_v19 = vadd.f32 %v123_v18, %v108_v13  ;;  %v5137_v13 = vmov 0.0  }
  0x92   :  { %v4853_v20 = vpack.c.bf16 %v128_v19, %v127_v17 }
  0x94   :  { %4854 = vmatprep.subr.bf16.mxu0 %v4853_v20  ;;  %v156_v31 = vpop.permute.xlu1 %155 }
  0x95   :  { %4856 = vmatpush3.bf16.msra.mxu0 %v4853_v20 }
  0x96   :  { %4865 = vmatprep.subr.bf16.mxu0 %v5135_v12 }
  0x98   :  { %4562 = vmatmul.mubr.msk.f32.vlgmr.msra.gmra.mrb[0].mxu0 %vm213_vm1, %v130_v21 }
  0x99   :  { %4564 = vmatprep.mubr.msk.f32.mxu0 %vm213_vm1, %v131_v22 }
  0x9c   :  { %4565 = vmatmul.mubr.msk.f32.gmra.mrb[2].mxu0 %vm213_vm1, %v132_v23 }
  0x9d   :  { %4567 = vmatprep.mubr.msk.f32.mxu0 %vm213_vm1, %v133_v24  ;;  %v5148_v24 = vmov 15  }
  0xa0   :  { %4568 = vmatmul.mubr.msk.f32.gmra.mrb[4].mxu0 %vm213_vm1, %v134_v25 }
  0xa1   :  { %4570 = vmatprep.mubr.msk.f32.mxu0 %vm213_vm1, %v135_v27 }
  0xa4   :  { %4571 = vmatmul.mubr.msk.f32.gmra.mrb[6].mxu0 %vm213_vm1, %v136_v28 }
  0xa5   :  { %4573 = vmatprep.mubr.msk.f32.mxu0 %vm213_vm1, %v137_v29 }
  0xa8   :  { %4574 = vmatmul.mubr.msk.f32.gmra.mrb[8].mxu0 %vm213_vm1, %v138_v30 }
  0xcd   :  { %v176_v37 = vpop.permute.xlu0 %175 }
 0x16b   :  { %v4563_v32 = vpop.f32.mrb[0].mxu0 }
 0x16c   :  { %v316_v33 = vpop.f32.mrb[1].mxu0 }
 0x16d   :  { %v317_v34 = vadd.f32 %v316_v33, %v156_v31  ;;  %v4216_v33 = vld [vmem:[%s6064_s1 + $0x10] sm:$0xff] }
 0x16f   :  { %377 = vxpose.xlu1.b32.start.end [1/1] (short) (narrow) %v317_v34, 16  ;;  %v5304_v35 = vpop.f32.mrb[2].mxu0 }
 0x170   :  { %v5306_v36 = vpop.f32.mrb[3].mxu0 }
 0x173   :  { %v5308_v38 = vpop.f32.mrb[4].mxu0 }
 0x174   :  { %v336_v39 = vpop.f32.mrb[5].mxu0 }
 0x175   :  { %v337_v40 = vadd.f32 %v336_v39, %v176_v37  ;;  %v4217_v37 = vld [vmem:[%s6064_s1 + $0x18] sm:$0xff] }
 0x177   :  { %4579 = vmatprep.subr.mxu1 %v337_v40  ;;  %v5313_v45 = vpop.f32.mrb[6].mxu0 }
 0x178   :  { %4580 = vmatpush3.msra.mxu1 %v337_v40  ;;  %v5315_v46 = vpop.f32.mrb[7].mxu0 }
 0x179   :  { %4857 = vmatprep.subr.bf16.mxu1 %v5135_v12 }
 0x17b   :  { %v5317_v47 = vpop.f32.mrb[8].mxu0 }
 0x17c   :  { %v356_v57 = vpop.f32.mrb[9].mxu0 }
 0x191   :  { %160 = vperm.xlu1 %4995, %v5213_v5  }
 0x1ef   :  { %v393_v41 = vpop.trf.xlu1 }
 0x1f0   :  { %4581 = vmatprep.mubr.msk.f32.mxu1 %vm409_vm4, %v393_v41 }
 0x1f3   :  { %v394_v42 = vpop.trf.xlu1 }
 0x1f4   :  { %4582 = vmatmul.mubr.msk.f32.vlgmr.msra.gmra.mrb[0].mxu1 %vm409_vm4, %v394_v42 }
 0x1f5   :  { %4588 = vmatprep.mubr.msk.f32.mxu1 %vm5136_vm5, %v5137_v13 }
 0x210   :  { %v161_v43 = vpop.permute.xlu1 %160 }
 0x211   :  { %v322_v44 = vadd.f32 %v4563_v32, %v161_v43 }
 0x213   :  { %599 = vxpose.xlu1.b32.start.end [1/1] (short) (narrow) %v322_v44, 16 }
 0x235   :  { %200 = vperm.xlu1 %4995, %v150_v48  }
 0x293   :  { %v615_v28 = vpop.trf.xlu1 }
 0x297   :  { %v616_v30 = vpop.trf.xlu1 }
 0x2c7   :  { %v4583_v50 = vpop.f32.mrb[0].mxu1 }
 0x2c8   :  { %v482_v52 = vpop.f32.mrb[1].mxu1  ;;  %v488_v54 = vadd.f32 %v4583_v50, %v376_v51 }
 0x2c9   :  { %v483_v53 = vadd.f32 %v482_v52, %v375_v49 }
 0x2ca   :  { %v494_v56 = vsel %vm34_vm0, %v488_v54, -inf }
 0x2cb   :  { %v491_v55 = vsel %vm34_vm0, %v483_v53, -inf }
 0x2cc   :  { %492 = vmax.xlane.f32.xlu0 %v491_v55 }
 0x2d0   :  { %495 = vmax.xlane.f32.xlu0 %v494_v56  ;;  %v5374_v56 = vld [vmem:[%s6061_s6 + $0x30] sm:$0xff] }
 0x2e6   :  { %195 = vperm.xlu0 %4996, %v149_v58  }
 0x359   :  { %v493_v59 = vpop.xlane.xlu0 %492 }
 0x35a   :  { %v497_v60 = vsub.f32 %v483_v53, %v493_v59 }
 0x35c   :  { %v499_v63 = vmul.f32 1.442695, %v497_v60 }
 0x35d   :  { %v496_v61 = vpop.xlane.xlu0 %495 }
 0x35e   :  { %v498_v62 = vsub.f32 %v488_v54, %v496_v61 }
 0x360   :  { %v501_v0 = vmul.f32 1.442695, %v498_v62 }
 0x362   :  { %5032 = vpow2.f32 %v501_v0 }
 0x363   :  { %5034 = vpow2.f32 %v499_v63 }
 0x365   :  { %v196_v16 = vpop.permute.xlu0 %195 }
 0x366   :  { %v357_v29 = vadd.f32 %v356_v57, %v196_v16 }
 0x36c   :  { %v5033_v1 = vpop.eup %5032 }
 0x36d   :  { %v506_v8 = vsel %vm34_vm0, %v5033_v1, 0.0  ;;  %v5035_v9 = vpop.eup %5034 }
 0x36e   :  { %507 = vadd.xlane.f32.xlu0 %v506_v8  ;;  %v503_v10 = vsel %vm34_vm0, %v5035_v9, 0.0  ;;  %v201_v8 = vpop.permute.xlu1 %200 }
 0x372   :  { %504 = vadd.xlane.f32.xlu0 %v503_v10  ;;  %v4223_v10 = vld [vmem:[%s6065_s3 + $0x20] sm:$0xff] }
 0x388   :  { %180 = vperm.xlu0 %4996, %v5338_v11  }
 0x3fb   :  { %v508_v17 = vpop.xlane.xlu0 %507 }
 0x3fc   :  { %5036 = vrcp.f32 %v508_v17  ;;  %v4224_v17 = vld [vmem:[%s6065_s3 + $0x28] sm:$0xff] }
 0x3ff   :  { %v505_v18 = vpop.xlane.xlu0 %504 }
 0x400   :  { %5038 = vrcp.f32 %v505_v18 }
 0x406   :  { %v5037_v19 = vpop.eup %5036 }
 0x407   :  { %v512_v21 = vmul.f32 %v5037_v19, %v5033_v1  ;;  %v181_v23 = vpop.permute.xlu0 %180 }
 0x408   :  { %v342_v27 = vadd.f32 %v5308_v38, %v181_v23 }
 0x40a   :  { %v5039_v20 = vpop.eup %5038 }
 0x40b   :  { %v511_v22 = vmul.f32 %v5039_v20, %v5035_v9  ;;  %v362_v9 = vadd.f32 %v5317_v47, %v201_v8  ;;  %v4225_v47 = vld [vmem:[%s6065_s3 + $0x30] sm:$0xff]  ;;  %v4226_v20 = vld [vmem:[%s6065_s3 + $0x38] sm:$0xff] }
 0x40d   :  { %v4858_v25 = vpack.c.bf16 %v512_v21, %v511_v22  ;;  %v592_v21 = vld [vmem:[%s6065_s3] sm:$0xff]  ;;  %v594_v22 = vld [vmem:[%s6065_s3 + $0x10] sm:$0xff] }
 0x40f   :  { %4860 = vmatpush3.bf16.xpose.msk.msra.mxu1 %vm5347_vm6, %v4858_v25  ;;  %v595_v25 = vld [vmem:[%s6065_s3 + $0x18] sm:$0xff] }
 0x410   :  { %4591 = vmatprep.subr.mxu1 %v342_v27 }
 0x416   :  { %4589 = vmatmul.mubr.msk.f32.vlgmr.msra.gmra.mrb[2].mxu1 %vm34_vm0, %v357_v29  ;;  %v140_v29 = vld [vmem:[%s6063_s2 + $0x58] sm:$0xff] }
 0x417   :  { %4592 = vmatpush3.msra.mxu1 %v342_v27  ;;  %4593 = vmatprep.mubr.msk.f32.mxu1 %vm409_vm4, %v615_v28  ;;  %v139_v28 = vld [vmem:[%s6063_s2 + $0x50] sm:$0xff] }
 0x418   :  { %4861 = vmatprep.subr.bf16.mxu1 %v5135_v12  ;;  %4576 = vmatprep.mubr.msk.f32.mxu0 %vm213_vm1, %v139_v28 }
 0x419   :  { %4577 = vmatmul.mubr.msk.f32.gmra.mrb[10].mxu0 %vm213_vm1, %v140_v29 }
 0x41a   :  { %4594 = vmatmul.mubr.msk.f32.vlgmr.msra.gmra.mrb[4].mxu1 %vm409_vm4, %v616_v30  ;;  %4628 = vmatprep.mubr.msk.f32.mxu0 %vm5136_vm5, %v5137_v13  ;;  %v4236_v30 = vld [vmem:[%s6064_s1 + $0x28] sm:$0xff] }
 0x41b   :  { %4600 = vmatprep.mubr.msk.f32.mxu1 %vm5136_vm5, %v5137_v13 }
 0x4e9   :  { %v588_v31 = vpop.f32.mrb[2].mxu1 }
 0x4ea   :  { %v4590_v32 = vpop.f32.mrb[3].mxu1 }
 0x4ed   :  { %v4595_v34 = vpop.f32.mrb[4].mxu1 }
 0x4ee   :  { %v703_v38 = vpop.f32.mrb[5].mxu1  ;;  %v709_v40 = vadd.f32 %v4595_v34, %v4217_v37 }
 0x4ef   :  { %v704_v39 = vadd.f32 %v4216_v33, %v703_v38 }
 0x4f0   :  { %v715_v42 = vsel %vm34_vm0, %v709_v40, -inf }
 0x4f1   :  { %v712_v41 = vsel %vm34_vm0, %v704_v39, -inf }
 0x4f2   :  { %713 = vmax.xlane.f32.xlu0 %v712_v41 }
 0x4f6   :  { %716 = vmax.xlane.f32.xlu0 %v715_v42 }
 0x57f   :  { %v714_v43 = vpop.xlane.xlu0 %713 }
 0x580   :  { %v718_v44 = vsub.f32 %v704_v39, %v714_v43 }
 0x582   :  { %v720_v48 = vmul.f32 1.442695, %v718_v44 }
 0x583   :  { %v717_v49 = vpop.xlane.xlu0 %716 }
 0x584   :  { %5040 = vpow2.f32 %v720_v48  ;;  %v719_v50 = vsub.f32 %v709_v40, %v717_v49 }
 0x586   :  { %v722_v51 = vmul.f32 1.442695, %v719_v50 }
 0x588   :  { %5042 = vpow2.f32 %v722_v51 }
 0x58e   :  { %v5041_v52 = vpop.eup %5040 }
 0x58f   :  { %v724_v53 = vsel %vm34_vm0, %v5041_v52, 0.0 }
 0x590   :  { %725 = vadd.xlane.f32.xlu0 %v724_v53  ;;  %v5441_v53 = vld [vmem:[%s6061_s6 + $0x38] sm:$0xff] }
 0x592   :  { %v5043_v54 = vpop.eup %5042 }
 0x593   :  { %v727_v55 = vsel %vm34_vm0, %v5043_v54, 0.0 }
 0x594   :  { %728 = vadd.xlane.f32.xlu0 %v727_v55  ;;  %v5447_v55 = vpop.f32.mrb[10].mxu0 }
 0x5aa   :  { %165 = vperm.xlu0 %4996, %v5238_v14  }
 0x5ae   :  { %185 = vperm.xlu0 %4996, %v5374_v56  }
 0x61d   :  { %v726_v57 = vpop.xlane.xlu0 %725 }
 0x61e   :  { %5044 = vrcp.f32 %v726_v57  ;;  %v366_v57 = vpop.f32.mrb[11].mxu0 }
 0x621   :  { %v729_v58 = vpop.xlane.xlu0 %728 }
 0x622   :  { %5046 = vrcp.f32 %v729_v58 }
 0x628   :  { %v5045_v60 = vpop.eup %5044 }
 0x629   :  { %v166_v59 = vpop.permute.xlu0 %165  ;;  %v732_v63 = vmul.f32 %v5045_v60, %v5041_v52 }
 0x62a   :  { %v327_v61 = vadd.f32 %v5306_v36, %v166_v59 }
 0x62c   :  { %v5047_v62 = vpop.eup %5046  ;;  %1015 = vxpose.xlu0.b32.start.end [1/1] (short) (narrow) %v327_v61, 16 }
 0x62d   :  { %v733_v0 = vmul.f32 %v5047_v62, %v5043_v54  ;;  %v186_v36 = vpop.permute.xlu0 %185  ;;  %v151_v54 = vld [vmem:[%s6061_s6 + $0x50] sm:$0xff] }
 0x62e   :  { %v347_v19 = vadd.f32 %v5315_v46, %v186_v36  ;;  %v593_v46 = vld [vmem:[%s6065_s3 + $0x8] sm:$0xff] }
 0x62f   :  { %v4862_v1 = vpack.c.bf16 %v733_v0, %v732_v63 }
 0x631   :  { %4864 = vmatpush3.bf16.xpose.msk.msra.mxu1 %vm5347_vm6, %v4862_v1 }
 0x638   :  { %4601 = vmatmul.mubr.msk.f32.vlgmr.msra.gmra.mrb[6].mxu1 %vm34_vm0, %v362_v9 }
 0x639   :  { %4605 = vmatprep.mubr.msk.f32.mxu1 %vm409_vm4, %v4223_v10 }
 0x6ac   :  { %v1031_v23 = vpop.trf.xlu0 }
 0x6b0   :  { %v1032_v27 = vpop.trf.xlu0 }
 0x70b   :  { %v809_v16 = vpop.f32.mrb[6].mxu1 }
 0x70c   :  { %v4602_v18 = vpop.f32.mrb[7].mxu1  ;;  %4603 = vmatprep.subr.mxu1 %v809_v16 }
 0x70d   :  { %4604 = vmatpush3.msra.mxu1 %v809_v16 }
 0x70e   :  { %4606 = vmatmul.mubr.msk.f32.vlgmr.msra.gmra.mrb[8].mxu1 %vm409_vm4, %v4224_v17  ;;  %4611 = vmatprep.subr.mxu1 %v588_v31 }
 0x70f   :  { %4612 = vmatpush3.msra.mxu1 %v588_v31  ;;  %4608 = vmatprep.mubr.msk.f32.mxu1 %vm409_vm4, %v4225_v47  ;;  %v4235_v31 = vld [vmem:[%s6064_s1 + $0x20] sm:$0xff] }
 0x710   :  { %4619 = vmatprep.subr.mxu1 %v347_v19 }
 0x712   :  { %4609 = vmatmul.mubr.msk.f32.gmra.mrb[10].mxu1 %vm409_vm4, %v4226_v20 }
 0x713   :  { %4613 = vmatprep.mubr.msk.f32.mxu1 %vm409_vm4, %v592_v21 }
 0x716   :  { %4614 = vmatmul.mubr.msk.f32.vlgmr.msra.gmra.mrb[8].mxu1 %vm409_vm4, %v593_v46 }
 0x717   :  { %4620 = vmatpush3.msra.mxu1 %v347_v19  ;;  %4616 = vmatprep.mubr.msk.f32.mxu1 %vm409_vm4, %v594_v22  ;;  %v4250_v19 = vld [vmem:[%s6064_s1 + $0x30] sm:$0xff] }
 0x71a   :  { %4617 = vmatmul.mubr.msk.f32.gmra.mrb[10].mxu1 %vm409_vm4, %v595_v25 }
 0x71b   :  { %4621 = vmatprep.mubr.msk.f32.mxu1 %vm409_vm4, %v1031_v23 }
 0x71e   :  { %4622 = vmatmul.mubr.msk.f32.vlgmr.msra.gmra.mrb[12].mxu1 %vm409_vm4, %v1032_v27 }
 0x7f1   :  { %v4623_v32 = vpop.f32.mrb[12].mxu1 }
 0x7f2   :  { %v1125_v33 = vadd.f32 %v4623_v32, %v4236_v30  ;;  %v1119_v34 = vpop.f32.mrb[13].mxu1 }
 0x7f3   :  { %v1120_v37 = vadd.f32 %v4235_v31, %v1119_v34 }
 0x7f4   :  { %v1131_v38 = vsel %vm34_vm0, %v1125_v33, -inf }
 0x7f5   :  { %1132 = vmax.xlane.f32.xlu0 %v1131_v38  ;;  %v1128_v39 = vsel %vm34_vm0, %v1120_v37, -inf }
 0x7f6   :  { %1129 = vmax.xlane.f32.xlu1 %v1128_v39  ;;  %v152_v39 = vld [vmem:[%s6061_s6 + $0x58] sm:$0xff] }
 0x807   :  { %170 = vperm.xlu1 %4995, %v5243_v15  }
 0x882   :  { %v1133_v40 = vpop.xlane.xlu0 %1132 }
 0x883   :  { %v1135_v41 = vsub.f32 %v1125_v33, %v1133_v40  ;;  %v1130_v42 = vpop.xlane.xlu1 %1129  ;;  %v4242_v40 = vld [vmem:[%s6065_s3 + $0x40] sm:$0xff] }
 0x884   :  { %v1134_v43 = vsub.f32 %v1120_v37, %v1130_v42  ;;  %4633 = vmatprep.mubr.msk.f32.mxu1 %vm409_vm4, %v4242_v40  ;;  %v4244_v42 = vld [vmem:[%s6065_s3 + $0x50] sm:$0xff] }
 0x885   :  { %v1138_v44 = vmul.f32 1.442695, %v1135_v41  ;;  %v4243_v41 = vld [vmem:[%s6065_s3 + $0x48] sm:$0xff] }
 0x886   :  { %v1136_v48 = vmul.f32 1.442695, %v1134_v43  ;;  %v4245_v43 = vld [vmem:[%s6065_s3 + $0x58] sm:$0xff] }
 0x887   :  { %5048 = vpow2.f32 %v1138_v44  ;;  %v171_v58 = vpop.permute.xlu1 %170 }
 0x888   :  { %5050 = vpow2.f32 %v1136_v48  ;;  %v332_v59 = vadd.f32 %v5304_v35, %v171_v58 }
 0x891   :  { %v5049_v49 = vpop.eup %5048 }
 0x892   :  { %v5051_v50 = vpop.eup %5050  ;;  %v1143_v51 = vsel %vm34_vm0, %v5049_v49, 0.0 }
 0x893   :  { %1144 = vadd.xlane.f32.xlu0 %v1143_v51  ;;  %v1140_v52 = vsel %vm34_vm0, %v5051_v50, 0.0 }
 0x894   :  { %1141 = vadd.xlane.f32.xlu1 %v1140_v52 }
 0x8a5   :  { %190 = vperm.xlu1 %4995, %v5441_v53  }
 0x8a9   :  { %205 = vperm.xlu0 %4996, %v151_v54  }
 0x8c7   :  { %1338 = vxpose.xlu0.b32.start.end [1/1] (short) (narrow) %v332_v59, 16  ;;  %v4257_v59 = vld [vmem:[%s6065_s3 + $0x60] sm:$0xff] }
 0x920   :  { %v1145_v60 = vpop.xlane.xlu0 %1144 }
 0x921   :  { %5052 = vrcp.f32 %v1145_v60  ;;  %v1142_v61 = vpop.xlane.xlu1 %1141  ;;  %v5138_v60 = vmov 2  }
 0x922   :  { %5054 = vrcp.f32 %v1142_v61  ;;  %v5139_v61 = vmov 6  }
 0x923   :  { %4998 = vset.pattern.permute.xlu0 %v5139_v61 }
 0x925   :  { %v191_v8 = vpop.permute.xlu1 %190 }
 0x926   :  { %v352_v10 = vadd.f32 %v5313_v45, %v191_v8  ;;  %v4251_v45 = vld [vmem:[%s6064_s1 + $0x38] sm:$0xff]  ;;  %v1780_v8 = vld [vmem:[%s6061_s6 + $0x8] sm:$0xff] }
 0x928   :  { %v206_v36 = vpop.permute.xlu0 %205 }
 0x929   :  { %v367_v16 = vadd.f32 %v366_v57, %v206_v36  ;;  %v1782_v36 = vld [vmem:[%s6061_s6 + $0x18] sm:$0xff] }
 0x92b   :  { %v5053_v62 = vpop.eup %5052 }
 0x92c   :  { %v5055_v63 = vpop.eup %5054  ;;  %v1149_v0 = vmul.f32 %v5053_v62, %v5049_v49 }
 0x92d   :  { %v1148_v1 = vmul.f32 %v5055_v63, %v5051_v50  ;;  %v4258_v63 = vld [vmem:[%s6065_s3 + $0x68] sm:$0xff] }
 0x92f   :  { %v4866_v9 = vpack.c.bf16 %v1149_v0, %v1148_v1  ;;  %v5141_v1 = vmov 1  }
 0x931   :  { %4868 = vmatpush3.bf16.xpose.msk.msra.mxu0 %vm5347_vm6, %v4866_v9 }
 0x932   :  { %4639 = vmatprep.subr.mxu0 %v352_v10 }
 0x938   :  { %4629 = vmatmul.mubr.msk.f32.vlgmr.msra.gmra.mrb[12].mxu0 %vm34_vm0, %v367_v16 }
 0x939   :  { %4640 = vmatpush3.msra.mxu0 %v352_v10  ;;  %v1781_v10 = vld [vmem:[%s6061_s6 + $0x10] sm:$0xff] }
 0x947   :  { %v1354_v35 = vpop.trf.xlu0 }
 0x948   :  { %4641 = vmatprep.mubr.msk.f32.mxu0 %vm409_vm4, %v1354_v35 }
 0x94b   :  { %v1355_v17 = vpop.trf.xlu0 }
 0x94c   :  { %4642 = vmatmul.mubr.msk.f32.vlgmr.msra.gmra.mrb[14].mxu0 %vm409_vm4, %v1355_v17 }
 0xa0b   :  { %v1225_v18 = vpop.f32.mrb[12].mxu0 }
 0xa0c   :  { %v4630_v47 = vpop.f32.mrb[13].mxu0  ;;  %4631 = vmatprep.subr.mxu1 %v1225_v18 }
 0xa0d   :  { %4632 = vmatpush3.msra.mxu1 %v1225_v18 }
 0xa0e   :  { %4869 = vmatprep.subr.bf16.mxu1 %v5135_v12  ;;  %4634 = vmatmul.mubr.msk.f32.vlgmr.msra.gmra.mrb[8].mxu1 %vm409_vm4, %v4243_v41 }
 0xa0f   :  { %4636 = vmatprep.mubr.msk.f32.mxu1 %vm409_vm4, %v4244_v42 }
 0xa12   :  { %4637 = vmatmul.mubr.msk.f32.gmra.mrb[10].mxu1 %vm409_vm4, %v4245_v43 }
 0xa13   :  { %4648 = vmatprep.mubr.msk.f32.mxu1 %vm5136_vm5, %v5137_v13 }
 0xa1f   :  { %v4643_v20 = vpop.f32.mrb[14].mxu0 }
 0xa20   :  { %v1448_v21 = vadd.f32 %v4643_v20, %v4251_v45  ;;  %v1442_v46 = vpop.f32.mrb[15].mxu0 }
 0xa21   :  { %v1443_v22 = vadd.f32 %v4250_v19, %v1442_v46 }
 0xa22   :  { %v1454_v23 = vsel %vm34_vm0, %v1448_v21, -inf }
 0xa23   :  { %1455 = vmax.xlane.f32.xlu0 %v1454_v23  ;;  %v1451_v25 = vsel %vm34_vm0, %v1443_v22, -inf }
 0xa24   :  { %1452 = vmax.xlane.f32.xlu1 %v1451_v25 }
 0xa39   :  { %1732 = vperm.xlu0 %4998, %v5196_v2  }
 0xa3d   :  { %5004 = vset.pattern.permute.xlu0 %v5141_v1 }
 0xa3e   :  { %1809 = vperm.xlu0 %5004, %v5285_v26  }
 0xa42   :  { %1824 = vperm.xlu0 %5004, %v5441_v53  }
 0xab0   :  { %v1456_v27 = vpop.xlane.xlu0 %1455 }
 0xab1   :  { %v1458_v28 = vsub.f32 %v1448_v21, %v1456_v27  ;;  %v1453_v29 = vpop.xlane.xlu1 %1452 }
 0xab2   :  { %v1457_v30 = vsub.f32 %v1443_v22, %v1453_v29 }
 0xab3   :  { %v1461_v31 = vmul.f32 1.442695, %v1458_v28 }
 0xab4   :  { %v1459_v32 = vmul.f32 1.442695, %v1457_v30 }
 0xab5   :  { %5056 = vpow2.f32 %v1461_v31 }
 0xab6   :  { %5058 = vpow2.f32 %v1459_v32 }
 0xabf   :  { %v5057_v33 = vpop.eup %5056 }
 0xac0   :  { %v1466_v34 = vsel %vm34_vm0, %v5057_v33, 0.0  ;;  %v5059_v37 = vpop.eup %5058 }
 0xac1   :  { %1467 = vadd.xlane.f32.xlu1 %v1466_v34  ;;  %v1463_v38 = vsel %vm34_vm0, %v5059_v37, 0.0 }
 0xac5   :  { %1464 = vadd.xlane.f32.xlu1 %v1463_v38 }
 0xad6   :  { %210 = vperm.xlu1 %4995, %v152_v39  }
 0xada   :  { %4997 = vset.pattern.permute.xlu1 %v5138_v60 }
 0xadb   :  { %1663 = vperm.xlu1 %4997, %v5196_v2  }
 0xadf   :  { %1667 = vperm.xlu1 %4997, %v5213_v5  }
 0xae3   :  { %1671 = vperm.xlu1 %4997, %v5238_v14  }
 0xae7   :  { %1675 = vperm.xlu1 %4997, %v5243_v15  }
 0xaeb   :  { %4999 = vset.pattern.permute.xlu1 %v5139_v61 }
 0xaec   :  { %1736 = vperm.xlu1 %4999, %v5213_v5  }
 0xb4e   :  { %v1468_v44 = vpop.xlane.xlu1 %1467 }
 0xb4f   :  { %5060 = vrcp.f32 %v1468_v44 }
 0xb52   :  { %v1465_v48 = vpop.xlane.xlu1 %1464 }
 0xb53   :  { %5062 = vrcp.f32 %v1465_v48 }
 0xb56   :  { %v211_v57 = vpop.permute.xlu1 %210 }
 0xb57   :  { %v372_v58 = vadd.f32 %v5447_v55, %v211_v57  ;;  %v5140_v55 = vmov 7  }
 0xb58   :  { %5000 = vset.pattern.permute.xlu1 %v5140_v55 }
 0xb59   :  { %v5061_v49 = vpop.eup %5060  ;;  %1752 = vperm.xlu1 %5000, %v5196_v2   ;;  %v4259_v2 = vld [vmem:[%s6065_s3 + $0x70] sm:$0xff] }
 0xb5a   :  { %v1472_v51 = vmul.f32 %v5061_v49, %v5057_v33  ;;  %v1664_v9 = vpop.permute.xlu1 %1663 }
 0xb5d   :  { %v5063_v50 = vpop.eup %5062  ;;  %1756 = vperm.xlu1 %5000, %v5213_v5   ;;  %v4260_v5 = vld [vmem:[%s6065_s3 + $0x78] sm:$0xff] }
 0xb5e   :  { %v1471_v52 = vmul.f32 %v5063_v50, %v5059_v37  ;;  %v1668_v16 = vpop.permute.xlu1 %1667 }
 0xb60   :  { %v4870_v54 = vpack.c.bf16 %v1472_v51, %v1471_v52 }
 0xb61   :  { %5001 = vset.pattern.permute.xlu1 %v5139_v61 }
 0xb62   :  { %4872 = vmatpush3.bf16.xpose.msk.msra.mxu1 %vm5347_vm6, %v4870_v54  ;;  %1740 = vperm.xlu1 %5001, %v5238_v14   ;;  %v1672_v35 = vpop.permute.xlu1 %1671 }
 0xb66   :  { %1744 = vperm.xlu1 %5001, %v5243_v15   ;;  %v1676_v23 = vpop.permute.xlu1 %1675 }
 0xb69   :  { %4649 = vmatmul.mubr.msk.f32.vlgmr.msra.gmra.mrb[14].mxu1 %vm34_vm0, %v372_v58 }
 0xb6a   :  { %4653 = vmatprep.mubr.msk.f32.mxu1 %vm409_vm4, %v4257_v59  ;;  %5002 = vset.pattern.permute.xlu1 %v5140_v55 }
 0xb6b   :  { %1760 = vperm.xlu1 %5002, %v5238_v14   ;;  %v1771_v14 = vld [vmem:[%s6066_s4] sm:$0xff] }
 0xb6c   :  { %4667 = vmatprep.mubr.msk.f32.mxu0 %vm213_vm1, %v1771_v14 }
 0xb6f   :  { %1764 = vperm.xlu1 %5002, %v5243_v15   ;;  %v1779_v15 = vld [vmem:[%s6061_s6] sm:$0xff] }
 0xb73   :  { %5003 = vset.pattern.permute.xlu1 %v5141_v1 }
 0xb74   :  { %1789 = vperm.xlu1 %5003, %v1779_v15  }
 0xb78   :  { %1794 = vperm.xlu1 %5003, %v1780_v8  }
 0xb7c   :  { %1799 = vperm.xlu1 %5003, %v1781_v10  }
 0xb80   :  { %1804 = vperm.xlu1 %5003, %v1782_v36  }
 0xb84   :  { %1814 = vperm.xlu1 %5003, %v5338_v11  }
 0xb88   :  { %1819 = vperm.xlu1 %5003, %v5374_v56  }
 0xc3c   :  { %v1548_v62 = vpop.f32.mrb[14].mxu1 }
 0xc3d   :  { %v4650_v0 = vpop.f32.mrb[15].mxu1  ;;  %4651 = vmatprep.subr.mxu1 %v1548_v62 }
 0xc3e   :  { %4652 = vmatpush3.msra.mxu1 %v1548_v62  ;;  %v1737_v62 = vpop.permute.xlu1 %1736 }
 0xc3f   :  { %4654 = vmatmul.mubr.msk.f32.vlgmr.msra.gmra.mrb[8].mxu1 %vm409_vm4, %v4258_v63 }
 0xc40   :  { %4656 = vmatprep.mubr.msk.f32.mxu1 %vm409_vm4, %v4259_v2 }
 0xc43   :  { %4657 = vmatmul.mubr.msk.f32.gmra.mrb[10].mxu1 %vm409_vm4, %v4260_v5  ;;  %v1753_v5 = vpop.permute.xlu1 %1752 }
 0xc47   :  { %v1757_v14 = vpop.permute.xlu1 %1756 }
 0xc4b   :  { %v1741_v8 = vpop.permute.xlu1 %1740 }
 0xd12   :  { %v4655_v26 = vpop.f32.mrb[8].mxu1 }
 0xd13   :  { %v1659_v17 = vadd.f32 %v4655_v26, %v5208_v4  ;;  %v1635_v18 = vpop.f32.mrb[9].mxu1  ;;  %v1745_v26 = vpop.permute.xlu1 %1744 }
 0xd14   :  { %v1658_v53 = vadd.f32 %v1635_v18, %v5203_v3  ;;  %v1733_v18 = vpop.permute.xlu0 %1732 }
 0xd15   :  { %v5541_v47 = vadd.f32 %v1668_v16, %v1659_v17 }
 0xd16   :  { %v5543_v45 = vadd.f32 %v1664_v9, %v1658_v53  ;;  %v4658_v19 = vpop.f32.mrb[10].mxu1 }
 0xd17   :  { %v1661_v20 = vadd.f32 %v4658_v19, %v5223_v7  ;;  %v1645_v21 = vpop.f32.mrb[11].mxu1  ;;  %v1683_v46 = vsel %vm34_vm0, %v5541_v47, 0.0 }
 0xd18   :  { %v1682_v22 = vsel %vm34_vm0, %v5543_v45, 0.0  ;;  %v1660_v4 = vadd.f32 %v1645_v21, %v5218_v6 }
 0xd19   :  { %v5552_v3 = vadd.f32 %v1676_v23, %v1661_v20  ;;  %v1684_v27 = vadd.f32 %v1683_v46, %v1682_v22 }
 0xd1a   :  { %v5554_v25 = vadd.f32 %v1672_v35, %v1660_v4  ;;  %v1761_v35 = vpop.permute.xlu1 %1760 }
 0xd1b   :  { %v1687_v7 = vsel %vm34_vm0, %v5552_v3, 0.0 }
 0xd1c   :  { %v1685_v56 = vsel %vm34_vm0, %v5554_v25, 0.0 }
 0xd1d   :  { %v1686_v28 = vadd.f32 %v1685_v56, %v1684_v27 }
 0xd1e   :  { %v1765_v46 = vpop.permute.xlu1 %1764 }
 0xd1f   :  { %v1688_v29 = vadd.f32 %v1687_v7, %v1686_v28 }
 0xd21   :  { %v1689_v30 = vrot.slane %v1688_v29, 4 }
 0xd23   :  { %v1690_v31 = vadd.f32 %v1689_v30, %v1688_v29 }
 0xd25   :  { %v1691_v32 = vrot.slane %v1690_v31, 2 }
 0xd27   :  { %v1692_v33 = vadd.f32 %v1691_v32, %v1690_v31  ;;  %v1772_v32 = vld [vmem:[%s6066_s4 + $0x8] sm:$0xff] }
 0xd29   :  { %v1693_v34 = vrot.slane %v1692_v33, 1 }
 0xd2b   :  { %v1694_v6 = vadd.f32 %v1693_v34, %v1692_v33  ;;  %v1773_v33 = vld [vmem:[%s6066_s4 + $0x10] sm:$0xff]  ;;  %v1774_v34 = vld [vmem:[%s6066_s4 + $0x18] sm:$0xff] }
 0xd2d   :  { %v1695_v37 = vmul.f32 0.03125, %v1694_v6  ;;  %v1775_v6 = vld [vmem:[%s6066_s4 + $0x20] sm:$0xff] }
 0xd2f   :  { %v1696_v38 = vsub.f32 %v5543_v45, %v1695_v37  ;;  %v1697_v39 = vsub.f32 %v5541_v47, %v1695_v37  ;;  %v1698_v40 = vsub.f32 %v5554_v25, %v1695_v37  ;;  %v1699_v41 = vsub.f32 %v5552_v3, %v1695_v37  ;;  %v1776_v37 = vld [vmem:[%s6066_s4 + $0x28] sm:$0xff] }
 0xd31   :  { %v1700_v42 = vmul.f32 %v1696_v38, %v1696_v38  ;;  %v1701_v43 = vmul.f32 %v1697_v39, %v1697_v39  ;;  %v1702_v44 = vmul.f32 %v1698_v40, %v1698_v40  ;;  %v1703_v48 = vmul.f32 %v1699_v41, %v1699_v41 }
 0xd33   :  { %v1704_v49 = vsel %vm34_vm0, %v1700_v42, 0.0  ;;  %v1705_v50 = vsel %vm34_vm0, %v1701_v43, 0.0  ;;  %v1707_v52 = vsel %vm34_vm0, %v1702_v44, 0.0  ;;  %v1709_v57 = vsel %vm34_vm0, %v1703_v48, 0.0  ;;  %v5603_v42 = vld [vmem:[%s6061_s6] sm:$0xff]  ;;  %v5609_v43 = vld [vmem:[%s6061_s6 + $0x8] sm:$0xff] }
 0xd34   :  { %v1706_v51 = vadd.f32 %v1705_v50, %v1704_v49  ;;  %v5615_v44 = vld [vmem:[%s6061_s6 + $0x10] sm:$0xff]  ;;  %v5143_v48 = vmov 12   ;;  %v5622_v49 = vld [vmem:[%s6061_s6 + $0x18] sm:$0xff]  ;;  %v5144_v50 = vmov 13  }
 0xd36   :  { %v1708_v54 = vadd.f32 %v1707_v52, %v1706_v51  ;;  %v1790_v51 = vpop.permute.xlu1 %1789 }
 0xd38   :  { %v1710_v58 = vadd.f32 %v1709_v57, %v1708_v54 }
 0xd3a   :  { %v1711_v59 = vrot.slane %v1710_v58, 4  ;;  %v1795_v52 = vpop.permute.xlu1 %1794 }
 0xd3c   :  { %v1712_v60 = vadd.f32 %v1711_v59, %v1710_v58 }
 0xd3e   :  { %v1713_v61 = vrot.slane %v1712_v60, 2  ;;  %v1800_v54 = vpop.permute.xlu1 %1799 }
 0xd40   :  { %v1714_v55 = vadd.f32 %v1713_v61, %v1712_v60 }
 0xd42   :  { %v1715_v63 = vrot.slane %v1714_v55, 1  ;;  %v1805_v58 = vpop.permute.xlu1 %1804 }
 0xd44   :  { %v1716_v0 = vadd.f32 %v1715_v63, %v1714_v55 }
 0xd46   :  { %v1717_v2 = vmul.f32 0.032258064, %v1716_v0 }
 0xd48   :  { %5064 = vrsqrt.f32 %v1717_v2  ;;  %vm1720_vm7 = vcmp.eq.f32.partialorder %v1717_v2, inf  ;;  %v1723_v9 = vand.u32 2147483648, %v1717_v2  ;;  %vm1722_vm8 = vcmp.eq.f32.partialorder %v1717_v2, 0.0 }
 0xd52   :  { %v5065_v15 = vpop.eup %5064 }
 0xd53   :  { %v1719_v1 = vmul.f32 %v5065_v15, %v1717_v2 }
 0xd55   :  { %v1721_v10 = vsel %vm1720_vm7, %v1717_v2, %v1719_v1  ;;  %v1815_v1 = vpop.permute.xlu1 %1814 }
 0xd56   :  { %v1724_v36 = vsel %vm1722_vm8, %v1723_v9, %v1721_v10 }
 0xd57   :  { %v1725_v16 = vadd.f32 1e-06, %v1724_v36 }
 0xd59   :  { %5066 = vrcp.f32 %v1725_v16 }
 0xd63   :  { %v5067_v17 = vpop.eup %5066 }
 0xd64   :  { %v1728_v53 = vmul.f32 %v5067_v17, %v1697_v39  ;;  %v1729_v19 = vmul.f32 %v5067_v17, %v1698_v40  ;;  %v1730_v20 = vmul.f32 %v5067_v17, %v1699_v41  ;;  %v1727_v21 = vmul.f32 %v5067_v17, %v1696_v38  ;;  %v1777_v38 = vld [vmem:[%s6066_s4 + $0x30] sm:$0xff]  ;;  %v1778_v39 = vld [vmem:[%s6066_s4 + $0x38] sm:$0xff]  ;;  %v1964_v40 = vld [vmem:[%s6067_s5] sm:$0xff] }
 0xd65   :  { %v5142_v41 = vmov 3  }
 0xd66   :  { %v1748_v22 = vmul.f32 %v1737_v62, %v1728_v53  ;;  %v1749_v4 = vmul.f32 %v1741_v8, %v1729_v19  ;;  %v1750_v23 = vmul.f32 %v1745_v26, %v1730_v20  ;;  %v1747_v27 = vmul.f32 %v1733_v18, %v1727_v21  ;;  %5005 = vset.pattern.permute.xlu1 %v5142_v41  ;;  %v1820_v20 = vpop.permute.xlu1 %1819 }
 0xd67   :  { %5006 = vset.pattern.permute.xlu0 %v5142_v41  ;;  %2071 = vperm.xlu1 %5005, %v5603_v42  }
 0xd68   :  { %v1768_v56 = vadd.f32 %v1757_v14, %v1748_v22  ;;  %v1769_v28 = vadd.f32 %v1761_v35, %v1749_v4  ;;  %v1767_v7 = vadd.f32 %v1753_v5, %v1747_v27  ;;  %v1770_v29 = vadd.f32 %v1765_v46, %v1750_v23  ;;  %2075 = vperm.xlu0 %5006, %v5609_v43   ;;  %v1810_v14 = vpop.permute.xlu0 %1809 }
 0xd6a   :  { %v4873_v30 = vpack.c.bf16 %v1768_v56, %v1767_v7  ;;  %v4877_v31 = vpack.c.bf16 %v1770_v29, %v1769_v28  ;;  %v1965_v28 = vld [vmem:[%s6067_s5 + $0x8] sm:$0xff]  ;;  %v1966_v7 = vld [vmem:[%s6067_s5 + $0x10] sm:$0xff]  ;;  %v1967_v29 = vld [vmem:[%s6067_s5 + $0x18] sm:$0xff] }
 0xd6b   :  { %2079 = vperm.xlu1 %5005, %v5615_v44  }
 0xd6c   :  { %4874 = vmatprep.subr.bf16.mxu0 %v4873_v30  ;;  %5007 = vset.pattern.permute.xlu0 %v5143_v48  ;;  %v1825_v18 = vpop.permute.xlu0 %1824 }
 0xd6d   :  { %4876 = vmatpush3.bf16.msra.mxu0 %v4873_v30  ;;  %2140 = vperm.xlu0 %5007, %v5603_v42   ;;  %v4277_v30 = vld [vmem:[%s6063_s2 + $0x60] sm:$0xff] }
 0xd6e   :  { %4878 = vmatprep.subr.bf16.mxu0 %v4877_v31  ;;  %4709 = vmatprep.mubr.msk.f32.mxu1 %vm213_vm1, %v4277_v30 }
 0xd6f   :  { %2083 = vperm.xlu1 %5005, %v5622_v49  }
 0xd71   :  { %4880 = vmatpush3.bf16.msra.mxu0 %v4877_v31  ;;  %5010 = vset.pattern.permute.xlu0 %v5144_v50  ;;  %v5145_v31 = vmov 8  }
 0xd72   :  { %2164 = vperm.xlu0 %5010, %v5609_v43  }
 0xd73   :  { %5008 = vset.pattern.permute.xlu1 %v5143_v48 }
 0xd74   :  { %4668 = vmatmul.mubr.msk.f32.vlgmr.msra.gmra.mrb[16].mxu0 %vm213_vm1, %v1772_v32  ;;  %2144 = vperm.xlu1 %5008, %v5609_v43   ;;  %v5654_v32 = vld [vmem:[%s6061_s6 + $0x20] sm:$0xff] }
 0xd75   :  { %4670 = vmatprep.mubr.msk.f32.mxu0 %vm213_vm1, %v1773_v33 }
 0xd76   :  { %2168 = vperm.xlu0 %5010, %v5615_v44  }
 0xd78   :  { %4671 = vmatmul.mubr.msk.f32.gmra.mrb[18].mxu0 %vm213_vm1, %v1774_v34  ;;  %5009 = vset.pattern.permute.xlu1 %v5144_v50 }
 0xd79   :  { %4673 = vmatprep.mubr.msk.f32.mxu0 %vm213_vm1, %v1775_v6  ;;  %2160 = vperm.xlu1 %5009, %v5603_v42  }
 0xd7a   :  { %5013 = vset.pattern.permute.xlu0 %v5145_v31 }
 0xd7b   :  { %2193 = vperm.xlu0 %5013, %v5603_v42  }
 0xd7c   :  { %4674 = vmatmul.mubr.msk.f32.gmra.mrb[20].mxu0 %vm213_vm1, %v1776_v37 }
 0xd7d   :  { %4676 = vmatprep.mubr.msk.f32.mxu0 %vm213_vm1, %v1777_v38  ;;  %5011 = vset.pattern.permute.xlu1 %v5143_v48 }
 0xd7e   :  { %2148 = vperm.xlu1 %5011, %v5615_v44  }
 0xd7f   :  { %2213 = vperm.xlu0 %5013, %v5338_v11  }
 0xd80   :  { %4677 = vmatmul.mubr.msk.f32.gmra.mrb[22].mxu0 %vm213_vm1, %v1778_v39 }
 0xd81   :  { %4695 = vmatprep.mubr.msk.f32.mxu0 %vm1968_vm9, %v1964_v40 }
 0xd82   :  { %2152 = vperm.xlu1 %5011, %v5622_v49  }
 0xd86   :  { %5012 = vset.pattern.permute.xlu1 %v5144_v50 }
 0xd87   :  { %2172 = vperm.xlu1 %5012, %v5622_v49  }
 0xd8b   :  { %5014 = vset.pattern.permute.xlu1 %v5145_v31 }
 0xd8c   :  { %2197 = vperm.xlu1 %5014, %v5609_v43  }
 0xd90   :  { %2209 = vperm.xlu1 %5014, %v5654_v32  }
 0xde6   :  { %v2072_v33 = vpop.permute.xlu1 %2071 }
 0xde7   :  { %v2076_v6 = vpop.permute.xlu0 %2075 }
 0xdea   :  { %v2080_v37 = vpop.permute.xlu1 %2079 }
 0xe47   :  { %v4669_v57 = vpop.f32.mrb[16].mxu0 }
 0xe48   :  { %v1923_v59 = vadd.f32 %v4669_v57, %v1795_v52  ;;  %v1917_v60 = vpop.f32.mrb[17].mxu0 }
 0xe49   :  { %v1918_v61 = vadd.f32 %v1917_v60, %v1790_v51 }
 0xe4a   :  { %v1957_v55 = vmax.f32 %v1923_v59, 0.0 }
 0xe4b   :  { %v1956_v62 = vmax.f32 %v1918_v61, 0.0  ;;  %v4672_v63 = vpop.f32.mrb[18].mxu0 }
 0xe4c   :  { %v1933_v0 = vadd.f32 %v4672_v63, %v1805_v58  ;;  %v1927_v2 = vpop.f32.mrb[19].mxu0 }
 0xe4d   :  { %v4881_v5 = vpack.c.bf16 %v1957_v55, %v1956_v62  ;;  %v1928_v15 = vadd.f32 %v1927_v2, %v1800_v54 }
 0xe4e   :  { %v1959_v8 = vmax.f32 %v1933_v0, 0.0 }
 0xe4f   :  { %v1958_v9 = vmax.f32 %v1928_v15, 0.0  ;;  %v4675_v10 = vpop.f32.mrb[20].mxu0  ;;  %4882 = vmatprep.subr.bf16.mxu0 %v4881_v5 }
 0xe50   :  { %v1943_v36 = vadd.f32 %v4675_v10, %v1815_v1  ;;  %v1937_v16 = vpop.f32.mrb[21].mxu0  ;;  %4884 = vmatpush3.bf16.msra.mxu0 %v4881_v5 }
 0xe51   :  { %v4885_v26 = vpack.c.bf16 %v1959_v8, %v1958_v9  ;;  %v1938_v35 = vadd.f32 %v1937_v16, %v1810_v14 }
 0xe52   :  { %v1961_v17 = vmax.f32 %v1943_v36, 0.0 }
 0xe53   :  { %v1960_v53 = vmax.f32 %v1938_v35, 0.0  ;;  %v4678_v19 = vpop.f32.mrb[22].mxu0  ;;  %4886 = vmatprep.subr.bf16.mxu0 %v4885_v26 }
 0xe54   :  { %v1953_v21 = vadd.f32 %v4678_v19, %v1825_v18  ;;  %v1947_v46 = vpop.f32.mrb[23].mxu0  ;;  %4888 = vmatpush3.bf16.msra.mxu0 %v4885_v26 }
 0xe55   :  { %v4889_v22 = vpack.c.bf16 %v1961_v17, %v1960_v53  ;;  %v1948_v4 = vadd.f32 %v1947_v46, %v1820_v20 }
 0xe56   :  { %v1963_v23 = vmax.f32 %v1953_v21, 0.0 }
 0xe57   :  { %v1962_v27 = vmax.f32 %v1948_v4, 0.0  ;;  %4890 = vmatprep.subr.bf16.mxu0 %v4889_v22 }
 0xe58   :  { %4892 = vmatpush3.bf16.msra.mxu0 %v4889_v22 }
 0xe59   :  { %v4893_v56 = vpack.c.bf16 %v1963_v23, %v1962_v27 }
 0xe5b   :  { %4894 = vmatprep.subr.bf16.mxu0 %v4893_v56 }
 0xe5c   :  { %4896 = vmatpush3.bf16.msra.mxu0 %v4893_v56 }
 0xe5f   :  { %4696 = vmatmul.mubr.msk.f32.vlgmr.msra.gmra.mrb[24].mxu0 %vm1968_vm9, %v1965_v28 }
 0xe60   :  { %4698 = vmatprep.mubr.msk.f32.mxu0 %vm1968_vm9, %v1966_v7 }
 0xe63   :  { %4699 = vmatmul.mubr.msk.f32.gmra.mrb[26].mxu0 %vm1968_vm9, %v1967_v29 }
 0xf32   :  { %v4697_v34 = vpop.f32.mrb[24].mxu0 }
 0xf33   :  { %v2067_v38 = vadd.f32 %v4697_v34, %v5541_v47  ;;  %v2047_v39 = vpop.f32.mrb[25].mxu0  ;;  %v2084_v47 = vpop.permute.xlu1 %2083 }
 0xf34   :  { %v2066_v40 = vadd.f32 %v2047_v39, %v5543_v45  ;;  %v2141_v39 = vpop.permute.xlu0 %2140 }
 0xf35   :  { %v5659_v41 = vadd.f32 %v2076_v6, %v2067_v38 }
 0xf36   :  { %v5661_v48 = vadd.f32 %v2072_v33, %v2066_v40  ;;  %v4700_v11 = vpop.f32.mrb[26].mxu0 }
 0xf37   :  { %v2069_v50 = vadd.f32 %v4700_v11, %v5552_v3  ;;  %v2057_v51 = vpop.f32.mrb[27].mxu0  ;;  %v2091_v54 = vsel %vm34_vm0, %v5659_v41, 0.0  ;;  %v2145_v7 = vpop.permute.xlu1 %2144 }
 0xf38   :  { %v2090_v52 = vsel %vm34_vm0, %v5661_v48, 0.0  ;;  %v2068_v57 = vadd.f32 %v2057_v51, %v5554_v25  ;;  %v2165_v11 = vpop.permute.xlu0 %2164 }
 0xf39   :  { %v5669_v58 = vadd.f32 %v2084_v47, %v2069_v50  ;;  %v2092_v59 = vadd.f32 %v2091_v54, %v2090_v52 }
 0xf3a   :  { %v5671_v45 = vadd.f32 %v2080_v37, %v2068_v57 }
 0xf3b   :  { %v2095_v3 = vsel %vm34_vm0, %v5669_v58, 0.0  ;;  %v2161_v31 = vpop.permute.xlu1 %2160 }
 0xf3c   :  { %v2093_v60 = vsel %vm34_vm0, %v5671_v45, 0.0  ;;  %v2169_v47 = vpop.permute.xlu0 %2168 }
 0xf3d   :  { %v2094_v61 = vadd.f32 %v2093_v60, %v2092_v59 }
 0xf3f   :  { %v2096_v55 = vadd.f32 %v2095_v3, %v2094_v61  ;;  %v2149_v38 = vpop.permute.xlu1 %2148 }
 0xf41   :  { %v2097_v62 = vrot.slane %v2096_v55, 4 }
 0xf43   :  { %v2098_v63 = vadd.f32 %v2097_v62, %v2096_v55  ;;  %v2153_v40 = vpop.permute.xlu1 %2152 }
 0xf45   :  { %v2099_v0 = vrot.slane %v2098_v63, 2 }
 0xf47   :  { %v2100_v2 = vadd.f32 %v2099_v0, %v2098_v63  ;;  %v2173_v59 = vpop.permute.xlu1 %2172 }
 0xf49   :  { %v2101_v5 = vrot.slane %v2100_v2, 1 }
 0xf4b   :  { %v2102_v25 = vadd.f32 %v2101_v5, %v2100_v2 }
 0xf4d   :  { %v2103_v14 = vmul.f32 0.03125, %v2102_v25 }
 0xf4f   :  { %v2104_v15 = vsub.f32 %v5661_v48, %v2103_v14  ;;  %v2105_v1 = vsub.f32 %v5659_v41, %v2103_v14  ;;  %v2106_v8 = vsub.f32 %v5671_v45, %v2103_v14  ;;  %v2107_v9 = vsub.f32 %v5669_v58, %v2103_v14  ;;  %v4278_v14 = vld [vmem:[%s6063_s2 + $0x68] sm:$0xff] }
 0xf51   :  { %v2108_v10 = vmul.f32 %v2104_v15, %v2104_v15  ;;  %v2109_v36 = vmul.f32 %v2105_v1, %v2105_v1  ;;  %v2110_v16 = vmul.f32 %v2106_v8, %v2106_v8  ;;  %v2111_v26 = vmul.f32 %v2107_v9, %v2107_v9 }
 0xf53   :  { %v2112_v35 = vsel %vm34_vm0, %v2108_v10, 0.0  ;;  %v2113_v17 = vsel %vm34_vm0, %v2109_v36, 0.0  ;;  %v2115_v53 = vsel %vm34_vm0, %v2110_v16, 0.0  ;;  %v2117_v20 = vsel %vm34_vm0, %v2111_v26, 0.0  ;;  %v4283_v10 = vld [vmem:[%s6063_s2 + $0x90] sm:$0xff]  ;;  %v4284_v36 = vld [vmem:[%s6063_s2 + $0x98] sm:$0xff]  ;;  %v2198_v26 = vpop.permute.xlu1 %2197 }
 0xf54   :  { %v2114_v18 = vadd.f32 %v2113_v17, %v2112_v35  ;;  %v4285_v16 = vld [vmem:[%s6063_s2 + $0xa0] sm:$0xff]  ;;  %v2194_v17 = vpop.permute.xlu0 %2193 }
 0xf56   :  { %v2116_v19 = vadd.f32 %v2115_v53, %v2114_v18 }
 0xf58   :  { %v2118_v21 = vadd.f32 %v2117_v20, %v2116_v19 }
 0xf5a   :  { %v2119_v46 = vrot.slane %v2118_v21, 4 }
 0xf5c   :  { %v2120_v22 = vadd.f32 %v2119_v46, %v2118_v21  ;;  %v4286_v21 = vld [vmem:[%s6063_s2 + $0xa8] sm:$0xff] }
 0xf5e   :  { %v2121_v4 = vrot.slane %v2120_v22, 2 }
 0xf60   :  { %v2122_v23 = vadd.f32 %v2121_v4, %v2120_v22  ;;  %v4287_v22 = vld [vmem:[%s6063_s2 + $0xb0] sm:$0xff]  ;;  %v2210_v4 = vpop.permute.xlu1 %2209 }
 0xf62   :  { %v2123_v27 = vrot.slane %v2122_v23, 1 }
 0xf64   :  { %v2124_v56 = vadd.f32 %v2123_v27, %v2122_v23  ;;  %v2214_v23 = vpop.permute.xlu0 %2213 }
 0xf66   :  { %v2125_v28 = vmul.f32 0.032258064, %v2124_v56  ;;  %v4288_v56 = vld [vmem:[%s6063_s2 + $0xb8] sm:$0xff] }
 0xf68   :  { %5068 = vrsqrt.f32 %v2125_v28  ;;  %vm2128_vm10 = vcmp.eq.f32.partialorder %v2125_v28, inf  ;;  %v2131_v33 = vand.u32 2147483648, %v2125_v28  ;;  %vm2130_vm11 = vcmp.eq.f32.partialorder %v2125_v28, 0.0 }
 0xf72   :  { %v5069_v29 = vpop.eup %5068 }
 0xf73   :  { %v2127_v30 = vmul.f32 %v5069_v29, %v2125_v28 }
 0xf75   :  { %v2129_v34 = vsel %vm2128_vm10, %v2125_v28, %v2127_v30 }
 0xf76   :  { %v2132_v6 = vsel %vm2130_vm11, %v2131_v33, %v2129_v34 }
 0xf77   :  { %v2133_v37 = vadd.f32 1e-06, %v2132_v6 }
 0xf79   :  { %5070 = vrcp.f32 %v2133_v37 }
 0xf83   :  { %v5071_v50 = vpop.eup %5070 }
 0xf84   :  { %v2136_v51 = vmul.f32 %v5071_v50, %v2105_v1  ;;  %v2137_v52 = vmul.f32 %v5071_v50, %v2106_v8  ;;  %v2135_v54 = vmul.f32 %v5071_v50, %v2104_v15  ;;  %v2138_v57 = vmul.f32 %v5071_v50, %v2107_v9  ;;  %v4279_v15 = vld [vmem:[%s6063_s2 + $0x70] sm:$0xff]  ;;  %v4280_v1 = vld [vmem:[%s6063_s2 + $0x78] sm:$0xff]  ;;  %v4281_v8 = vld [vmem:[%s6063_s2 + $0x80] sm:$0xff] }
 0xf85   :  { %v4282_v9 = vld [vmem:[%s6063_s2 + $0x88] sm:$0xff] }
 0xf86   :  { %v2156_v60 = vmul.f32 %v2145_v7, %v2136_v51  ;;  %v2157_v61 = vmul.f32 %v2149_v38, %v2137_v52  ;;  %v2155_v3 = vmul.f32 %v2141_v39, %v2135_v54  ;;  %v2158_v55 = vmul.f32 %v2153_v40, %v2138_v57  ;;  %v4302_v50 = vld [vmem:[%s6064_s1 + $0x48] sm:$0xff]  ;;  %v4301_v51 = vld [vmem:[%s6064_s1 + $0x40] sm:$0xff]  ;;  %v4312_v54 = vld [vmem:[%s6064_s1 + $0x50] sm:$0xff] }
 0xf88   :  { %v2175_v62 = vadd.f32 %v2161_v31, %v2155_v3  ;;  %v2176_v63 = vadd.f32 %v2165_v11, %v2156_v60  ;;  %v2177_v0 = vadd.f32 %v2169_v47, %v2157_v61  ;;  %v2178_v2 = vadd.f32 %v2173_v59, %v2158_v55 }
 0xf8a   :  { %v4897_v5 = vpack.c.bf16 %v2176_v63, %v2175_v62  ;;  %v4901_v25 = vpack.c.bf16 %v2178_v2, %v2177_v0  ;;  %v4313_v63 = vld [vmem:[%s6064_s1 + $0x58] sm:$0xff] }
 0xf8c   :  { %4898 = vmatprep.subr.bf16.mxu1 %v4897_v5 }
 0xf8d   :  { %4900 = vmatpush3.bf16.msra.mxu1 %v4897_v5 }
 0xf8e   :  { %4902 = vmatprep.subr.bf16.mxu1 %v4901_v25 }
 0xf91   :  { %4904 = vmatpush3.bf16.msra.mxu1 %v4901_v25  ;;  %v5117_v25 = vld [vmem:[%s6061_s6 + $0x48] sm:$0xff] }
 0xf94   :  { %4710 = vmatmul.mubr.msk.f32.vlgmr.msra.gmra.mrb[16].mxu1 %vm213_vm1, %v4278_v14 }
 0xf95   :  { %4712 = vmatprep.mubr.msk.f32.mxu1 %vm213_vm1, %v4279_v15 }
 0xf98   :  { %4713 = vmatmul.mubr.msk.f32.gmra.mrb[18].mxu1 %vm213_vm1, %v4280_v1 }
 0xf99   :  { %4715 = vmatprep.mubr.msk.f32.mxu1 %vm213_vm1, %v4281_v8 }
 0xf9c   :  { %4716 = vmatmul.mubr.msk.f32.gmra.mrb[20].mxu1 %vm213_vm1, %v4282_v9 }
 0xf9d   :  { %4718 = vmatprep.mubr.msk.f32.mxu1 %vm213_vm1, %v4283_v10 }
 0xfa0   :  { %4719 = vmatmul.mubr.msk.f32.gmra.mrb[22].mxu1 %vm213_vm1, %v4284_v36 }
 0xfa1   :  { %4721 = vmatprep.mubr.msk.f32.mxu1 %vm213_vm1, %v4285_v16 }
 0xfa4   :  { %4722 = vmatmul.mubr.msk.f32.gmra.mrb[24].mxu1 %vm213_vm1, %v4286_v21 }
 0xfa5   :  { %4724 = vmatprep.mubr.msk.f32.mxu1 %vm213_vm1, %v4287_v22 }
 0xfa8   :  { %4725 = vmatmul.mubr.msk.f32.gmra.mrb[26].mxu1 %vm213_vm1, %v4288_v56 }
0x1067   :  { %v4711_v35 = vpop.f32.mrb[16].mxu1 }
0x1068   :  { %v2348_v18 = vadd.f32 %v4711_v35, %v2198_v26  ;;  %v2342_v53 = vpop.f32.mrb[17].mxu1 }
0x1069   :  { %v2343_v19 = vadd.f32 %v2342_v53, %v2194_v17 }
0x106a   :  { %2626 = vxpose.xlu0.b32.start.end [1/1] (short) (narrow) %v2348_v18, 16 }
0x106b   :  { %2404 = vxpose.xlu1.b32.start.end [1/1] (short) (narrow) %v2343_v19, 16  ;;  %v5717_v20 = vpop.f32.mrb[18].mxu1 }
0x106c   :  { %v5722_v46 = vpop.f32.mrb[19].mxu1 }
0x106f   :  { %v4717_v27 = vpop.f32.mrb[20].mxu1 }
0x1070   :  { %v2368_v28 = vadd.f32 %v4717_v27, %v2214_v23  ;;  %v2362_v7 = vpop.f32.mrb[21].mxu1 }
0x1071   :  { %v2363_v29 = vadd.f32 %v2362_v7, %v2210_v4  ;;  %v5119_v7 = vld [vmem:[%s6061_s6 + $0x40] sm:$0xff] }
0x1072   :  { %4739 = vmatprep.subr.mxu1 %v2368_v28 }
0x1073   :  { %4727 = vmatprep.subr.mxu0 %v2363_v29  ;;  %4740 = vmatpush3.msra.mxu1 %v2368_v28  ;;  %v5734_v30 = vpop.f32.mrb[22].mxu1  ;;  %v5779_v28 = vld [vmem:[%s6061_s6 + $0x30] sm:$0xff] }
0x1074   :  { %4728 = vmatpush3.msra.mxu0 %v2363_v29  ;;  %v5736_v31 = vpop.f32.mrb[23].mxu1 }
0x1075   :  { %4905 = vmatprep.subr.bf16.mxu0 %v5135_v12 }
0x1077   :  { %v5744_v38 = vpop.f32.mrb[24].mxu1 }
0x1078   :  { %v5746_v39 = vpop.f32.mrb[25].mxu1 }
0x107b   :  { %v5748_v40 = vpop.f32.mrb[26].mxu1 }
0x107c   :  { %v5750_v11 = vpop.f32.mrb[27].mxu1 }
0x10ea   :  { %v2642_v33 = vpop.trf.xlu0 }
0x10eb   :  { %v2420_v34 = vpop.trf.xlu1  ;;  %4741 = vmatprep.mubr.msk.f32.mxu1 %vm409_vm4, %v2642_v33 }
0x10ec   :  { %4729 = vmatprep.mubr.msk.f32.mxu0 %vm409_vm4, %v2420_v34 }
0x10ee   :  { %v2643_v6 = vpop.trf.xlu0 }
0x10ef   :  { %v2421_v37 = vpop.trf.xlu1  ;;  %4742 = vmatmul.mubr.msk.f32.vlgmr.msra.gmra.mrb[28].mxu1 %vm409_vm4, %v2643_v6 }
0x10f0   :  { %4730 = vmatmul.mubr.msk.f32.vlgmr.msra.gmra.mrb[28].mxu0 %vm409_vm4, %v2421_v37 }
0x10f1   :  { %4736 = vmatprep.mubr.msk.f32.mxu0 %vm5136_vm5, %v5137_v13 }
0x11c2   :  { %v4743_v52 = vpop.f32.mrb[28].mxu1 }
0x11c3   :  { %v4731_v57 = vpop.f32.mrb[28].mxu0  ;;  %v2730_v47 = vpop.f32.mrb[29].mxu1  ;;  %v2736_v2 = vadd.f32 %v4743_v52, %v4313_v63 }
0x11c4   :  { %v2514_v59 = vadd.f32 %v4731_v57, %v4302_v50  ;;  %v2508_v60 = vpop.f32.mrb[29].mxu0  ;;  %v2731_v3 = vadd.f32 %v4312_v54, %v2730_v47 }
0x11c5   :  { %v2509_v61 = vadd.f32 %v4301_v51, %v2508_v60  ;;  %v2742_v5 = vsel %vm34_vm0, %v2736_v2, -inf }
0x11c6   :  { %v2520_v55 = vsel %vm34_vm0, %v2514_v59, -inf  ;;  %v2739_v0 = vsel %vm34_vm0, %v2731_v3, -inf }
0x11c7   :  { %2521 = vmax.xlane.f32.xlu1 %v2520_v55  ;;  %v2517_v62 = vsel %vm34_vm0, %v2509_v61, -inf }
0x11c8   :  { %2518 = vmax.xlane.f32.xlu0 %v2517_v62 }
0x11cc   :  { %2740 = vmax.xlane.f32.xlu0 %v2739_v0 }
0x11d0   :  { %2743 = vmax.xlane.f32.xlu0 %v2742_v5 }
0x11d8   :  { %2201 = vperm.xlu1 %5014, %v5615_v44  }
0x11dc   :  { %2229 = vperm.xlu1 %5014, %v5117_v25  }
0x1254   :  { %v2522_v8 = vpop.xlane.xlu1 %2521 }
0x1255   :  { %v2519_v14 = vpop.xlane.xlu0 %2518  ;;  %v2524_v10 = vsub.f32 %v2514_v59, %v2522_v8 }
0x1256   :  { %v2523_v15 = vsub.f32 %v2509_v61, %v2519_v14 }
0x1257   :  { %v2527_v26 = vmul.f32 1.442695, %v2524_v10 }
0x1258   :  { %v2525_v1 = vmul.f32 1.442695, %v2523_v15  ;;  %v2202_v29 = vpop.permute.xlu1 %2201 }
0x1259   :  { %v2741_v9 = vpop.xlane.xlu0 %2740  ;;  %v2353_v33 = vadd.f32 %v5722_v46, %v2202_v29 }
0x125a   :  { %5072 = vpow2.f32 %v2525_v1  ;;  %v2745_v35 = vsub.f32 %v2731_v3, %v2741_v9  ;;  %v4320_v9 = vld [vmem:[%s6065_s3 + $0xa8] sm:$0xff] }
0x125c   :  { %v2747_v53 = vmul.f32 1.442695, %v2745_v35  ;;  %v2230_v34 = vpop.permute.xlu1 %2229 }
0x125d   :  { %v2744_v36 = vpop.xlane.xlu0 %2743  ;;  %v2388_v5 = vadd.f32 %v5744_v38, %v2230_v34  ;;  %v4319_v38 = vld [vmem:[%s6065_s3 + $0xa0] sm:$0xff] }
0x125e   :  { %v2746_v16 = vsub.f32 %v2736_v2, %v2744_v36  ;;  %4753 = vmatprep.mubr.msk.f32.mxu1 %vm409_vm4, %v4319_v38 }
0x1260   :  { %v2749_v17 = vmul.f32 1.442695, %v2746_v16  ;;  %v4332_v16 = vld [vmem:[%s6064_s1 + $0x68] sm:$0xff] }
0x1262   :  { %5074 = vpow2.f32 %v2749_v17 }
0x1263   :  { %5076 = vpow2.f32 %v2527_v26 }
0x1264   :  { %v5073_v18 = vpop.eup %5072  ;;  %5078 = vpow2.f32 %v2747_v53 }
0x1265   :  { %v2529_v19 = vsel %vm34_vm0, %v5073_v18, 0.0 }
0x1266   :  { %2530 = vadd.xlane.f32.xlu1 %v2529_v19  ;;  %v5120_v19 = vld [vmem:[%s6061_s6 + $0x50] sm:$0xff] }
0x126c   :  { %v5075_v21 = vpop.eup %5074 }
0x126d   :  { %v2754_v22 = vsel %vm34_vm0, %v5075_v21, 0.0  ;;  %v5077_v4 = vpop.eup %5076 }
0x126e   :  { %2755 = vadd.xlane.f32.xlu0 %v2754_v22  ;;  %v2532_v23 = vsel %vm34_vm0, %v5077_v4, 0.0  ;;  %v5079_v27 = vpop.eup %5078 }
0x126f   :  { %v2751_v56 = vsel %vm34_vm0, %v5079_v27, 0.0 }
0x1272   :  { %2533 = vadd.xlane.f32.xlu0 %v2532_v23 }
0x1276   :  { %2752 = vadd.xlane.f32.xlu0 %v2751_v56 }
0x1277   :  { %2217 = vperm.xlu1 %5014, %v5779_v28  }
0x128c   :  { %2225 = vperm.xlu0 %5013, %v5119_v7  }
0x12a0   :  { %3042 = vxpose.xlu1.b32.start.end [1/1] (short) (narrow) %v2353_v33, 16 }
0x12c2   :  { %2205 = vperm.xlu1 %5014, %v5622_v49  }
0x12f3   :  { %v2531_v6 = vpop.xlane.xlu1 %2530 }
0x12f4   :  { %5080 = vrcp.f32 %v2531_v6  ;;  %v5829_v6 = vld [vmem:[%s6061_s6 + $0x38] sm:$0xff] }
0x12f7   :  { %v2218_v55 = vpop.permute.xlu1 %2217 }
0x12f8   :  { %v2373_v2 = vadd.f32 %v5736_v31, %v2218_v55 }
0x12fb   :  { %v2756_v37 = vpop.xlane.xlu0 %2755 }
0x12fe   :  { %v5081_v52 = vpop.eup %5080 }
0x12ff   :  { %v2534_v50 = vpop.xlane.xlu0 %2533  ;;  %v2537_v57 = vmul.f32 %v5081_v52, %v5073_v18 }
0x1300   :  { %5082 = vrcp.f32 %v2534_v50  ;;  %v4322_v50 = vld [vmem:[%s6065_s3 + $0xb8] sm:$0xff] }
0x1303   :  { %v2753_v51 = vpop.xlane.xlu0 %2752 }
0x1304   :  { %5084 = vrcp.f32 %v2753_v51 }
0x1305   :  { %5086 = vrcp.f32 %v2756_v37  ;;  %v4321_v37 = vld [vmem:[%s6065_s3 + $0xb0] sm:$0xff] }
0x130a   :  { %v5083_v54 = vpop.eup %5082 }
0x130b   :  { %v2538_v47 = vmul.f32 %v5083_v54, %v5077_v4  ;;  %v2226_v3 = vpop.permute.xlu0 %2225 }
0x130c   :  { %v2383_v63 = vadd.f32 %v5746_v39, %v2226_v3 }
0x130d   :  { %v4906_v59 = vpack.c.bf16 %v2538_v47, %v2537_v57 }
0x130e   :  { %v5085_v60 = vpop.eup %5084 }
0x130f   :  { %4908 = vmatpush3.bf16.xpose.msk.msra.mxu0 %vm5347_vm6, %v4906_v59  ;;  %v5087_v46 = vpop.eup %5086  ;;  %v2759_v61 = vmul.f32 %v5085_v60, %v5079_v27 }
0x1310   :  { %4909 = vmatprep.subr.bf16.mxu0 %v5135_v12  ;;  %v2760_v62 = vmul.f32 %v5087_v46, %v5075_v21 }
0x1312   :  { %v4910_v0 = vpack.c.bf16 %v2760_v62, %v2759_v61 }
0x1316   :  { %4737 = vmatmul.mubr.msk.f32.vlgmr.msra.gmra.mrb[30].mxu0 %vm34_vm0, %v2383_v63 }
0x1317   :  { %4912 = vmatpush3.bf16.xpose.msk.msra.mxu0 %vm5347_vm6, %v4910_v0  ;;  %4748 = vmatprep.mubr.msk.f32.mxu0 %vm5136_vm5, %v5137_v13  ;;  %v4308_v0 = vld [vmem:[%s6065_s3 + $0x80] sm:$0xff] }
0x1318   :  { %4767 = vmatprep.subr.mxu0 %v2373_v2 }
0x131e   :  { %4749 = vmatmul.mubr.msk.f32.vlgmr.msra.gmra.mrb[32].mxu0 %vm34_vm0, %v2388_v5  ;;  %v4346_v5 = vld [vmem:[%s6064_s1 + $0x70] sm:$0xff] }
0x131f   :  { %4768 = vmatpush3.msra.mxu0 %v2373_v2 }
0x1320   :  { %v3058_v25 = vpop.trf.xlu1  ;;  %4913 = vmatprep.subr.bf16.mxu0 %v5135_v12 }
0x1321   :  { %4769 = vmatprep.mubr.msk.f32.mxu0 %vm409_vm4, %v3058_v25 }
0x1324   :  { %v3059_v31 = vpop.trf.xlu1 }
0x1325   :  { %4770 = vmatmul.mubr.msk.f32.vlgmr.msra.gmra.mrb[34].mxu0 %vm409_vm4, %v3059_v31  ;;  %v4347_v31 = vld [vmem:[%s6064_s1 + $0x78] sm:$0xff] }
0x1326   :  { %4776 = vmatprep.mubr.msk.f32.mxu0 %vm5136_vm5, %v5137_v13 }
0x1341   :  { %v2206_v39 = vpop.permute.xlu1 %2205 }
0x1342   :  { %v2358_v14 = vadd.f32 %v5717_v20, %v2206_v39  ;;  %v4331_v20 = vld [vmem:[%s6064_s1 + $0x60] sm:$0xff] }
0x1344   :  { %3365 = vxpose.xlu1.b32.start.end [1/1] (short) (narrow) %v2358_v14, 16 }
0x13c4   :  { %v3381_v55 = vpop.trf.xlu1 }
0x13c8   :  { %v3382_v63 = vpop.trf.xlu1 }
0x13e9   :  { %v2614_v15 = vpop.f32.mrb[30].mxu0 }
0x13ea   :  { %v4738_v1 = vpop.f32.mrb[31].mxu0 }
0x13f1   :  { %v2836_v8 = vpop.f32.mrb[32].mxu0 }
0x13f2   :  { %v4750_v10 = vpop.f32.mrb[33].mxu0  ;;  %4751 = vmatprep.subr.mxu1 %v2836_v8 }
0x13f3   :  { %4752 = vmatpush3.msra.mxu1 %v2836_v8 }
0x13f4   :  { %4759 = vmatprep.subr.mxu1 %v2614_v15  ;;  %4754 = vmatmul.mubr.msk.f32.vlgmr.msra.gmra.mrb[30].mxu1 %vm409_vm4, %v4320_v9 }
0x13f5   :  { %4760 = vmatpush3.msra.mxu1 %v2614_v15  ;;  %4756 = vmatprep.mubr.msk.f32.mxu1 %vm409_vm4, %v4321_v37 }
0x13f8   :  { %v4771_v36 = vpop.f32.mrb[34].mxu0  ;;  %4757 = vmatmul.mubr.msk.f32.gmra.mrb[32].mxu1 %vm409_vm4, %v4322_v50 }
0x13f9   :  { %v3146_v26 = vpop.f32.mrb[35].mxu0  ;;  %v3152_v17 = vadd.f32 %v4771_v36, %v4332_v16  ;;  %4761 = vmatprep.mubr.msk.f32.mxu1 %vm409_vm4, %v4308_v0 }
0x13fa   :  { %v3147_v35 = vadd.f32 %v4331_v20, %v3146_v26 }
0x13fb   :  { %v3158_v53 = vsel %vm34_vm0, %v3152_v17, -inf }
0x13fc   :  { %v3155_v18 = vsel %vm34_vm0, %v3147_v35, -inf }
0x13fd   :  { %3156 = vmax.xlane.f32.xlu0 %v3155_v18  ;;  %v5122_v18 = vld [vmem:[%s6061_s6 + $0x58] sm:$0xff] }
0x1401   :  { %3159 = vmax.xlane.f32.xlu0 %v3158_v53  ;;  %v4310_v53 = vld [vmem:[%s6065_s3 + $0x90] sm:$0xff] }
0x1417   :  { %2233 = vperm.xlu0 %5013, %v5120_v19   ;;  %v4311_v19 = vld [vmem:[%s6065_s3 + $0x98] sm:$0xff] }
0x148a   :  { %v3157_v21 = vpop.xlane.xlu0 %3156 }
0x148b   :  { %v3161_v22 = vsub.f32 %v3147_v35, %v3157_v21  ;;  %v4338_v21 = vld [vmem:[%s6065_s3 + $0xc0] sm:$0xff] }
0x148d   :  { %v3163_v27 = vmul.f32 1.442695, %v3161_v22  ;;  %v4339_v22 = vld [vmem:[%s6065_s3 + $0xc8] sm:$0xff] }
0x148e   :  { %v3160_v4 = vpop.xlane.xlu0 %3159 }
0x148f   :  { %v3162_v23 = vsub.f32 %v3152_v17, %v3160_v4  ;;  %v4340_v4 = vld [vmem:[%s6065_s3 + $0xd0] sm:$0xff] }
0x1491   :  { %v3165_v56 = vmul.f32 1.442695, %v3162_v23  ;;  %v4341_v23 = vld [vmem:[%s6065_s3 + $0xd8] sm:$0xff] }
0x1493   :  { %5088 = vpow2.f32 %v3165_v56 }
0x1494   :  { %5090 = vpow2.f32 %v3163_v27 }
0x1496   :  { %v2234_v51 = vpop.permute.xlu0 %2233 }
0x1497   :  { %v2393_v62 = vadd.f32 %v5750_v11, %v2234_v51 }
0x149d   :  { %v5089_v7 = vpop.eup %5088 }
0x149e   :  { %v3170_v29 = vsel %vm34_vm0, %v5089_v7, 0.0  ;;  %v5091_v33 = vpop.eup %5090 }
0x149f   :  { %3171 = vadd.xlane.f32.xlu0 %v3170_v29  ;;  %v3167_v34 = vsel %vm34_vm0, %v5091_v33, 0.0 }
0x14a3   :  { %3168 = vadd.xlane.f32.xlu0 %v3167_v34 }
0x14b9   :  { %2221 = vperm.xlu0 %5013, %v5829_v6  }
0x152c   :  { %v3172_v52 = vpop.xlane.xlu0 %3171 }
0x152d   :  { %5092 = vrcp.f32 %v3172_v52  ;;  %v5146_v52 = vmov 10  }
0x1530   :  { %v3169_v54 = vpop.xlane.xlu0 %3168 }
0x1531   :  { %5094 = vrcp.f32 %v3169_v54  ;;  %v5147_v54 = vmov 14  }
0x1532   :  { %5016 = vset.pattern.permute.xlu1 %v5147_v54 }
0x1537   :  { %v5093_v57 = vpop.eup %5092 }
0x1538   :  { %v3176_v59 = vmul.f32 %v5093_v57, %v5089_v7  ;;  %v2222_v46 = vpop.permute.xlu0 %2221  ;;  %v4354_v57 = vld [vmem:[%s6065_s3 + $0xe8] sm:$0xff] }
0x1539   :  { %v2378_v3 = vadd.f32 %v5734_v30, %v2222_v46  ;;  %v4309_v30 = vld [vmem:[%s6065_s3 + $0x88] sm:$0xff]  ;;  %v5125_v46 = vld [vmem:[%s6061_s6 + $0x18] sm:$0xff] }
0x153a   :  { %4762 = vmatmul.mubr.msk.f32.vlgmr.msra.gmra.mrb[30].mxu1 %vm409_vm4, %v4309_v30 }
0x153b   :  { %v5095_v47 = vpop.eup %5094  ;;  %4764 = vmatprep.mubr.msk.f32.mxu1 %vm409_vm4, %v4310_v53 }
0x153c   :  { %v3175_v60 = vmul.f32 %v5095_v47, %v5091_v33  ;;  %v4355_v47 = vld [vmem:[%s6065_s3 + $0xf0] sm:$0xff] }
0x153e   :  { %v4914_v61 = vpack.c.bf16 %v3176_v59, %v3175_v60  ;;  %4765 = vmatmul.mubr.msk.f32.gmra.mrb[32].mxu1 %vm409_vm4, %v4311_v19  ;;  %v5123_v59 = vld [vmem:[%s6061_s6] sm:$0xff]  ;;  %v5124_v60 = vld [vmem:[%s6061_s6 + $0x8] sm:$0xff] }
0x153f   :  { %4781 = vmatprep.mubr.msk.f32.mxu1 %vm409_vm4, %v4338_v21 }
0x1540   :  { %4916 = vmatpush3.bf16.xpose.msk.msra.mxu0 %vm5347_vm6, %v4914_v61  ;;  %v5126_v61 = vld [vmem:[%s6061_s6 + $0x10] sm:$0xff] }
0x1541   :  { %4787 = vmatprep.subr.mxu0 %v2378_v3 }
0x1547   :  { %4777 = vmatmul.mubr.msk.f32.vlgmr.msra.gmra.mrb[36].mxu0 %vm34_vm0, %v2393_v62 }
0x1548   :  { %4788 = vmatpush3.msra.mxu0 %v2378_v3  ;;  %4789 = vmatprep.mubr.msk.f32.mxu0 %vm409_vm4, %v3381_v55  ;;  %v5127_v55 = vld [vmem:[%s6061_s6 + $0x28] sm:$0xff] }
0x154b   :  { %4790 = vmatmul.mubr.msk.f32.vlgmr.msra.gmra.mrb[38].mxu0 %vm409_vm4, %v3382_v63 }
0x161a   :  { %v3252_v11 = vpop.f32.mrb[36].mxu0 }
0x161b   :  { %v4778_v2 = vpop.f32.mrb[37].mxu0  ;;  %4779 = vmatprep.subr.mxu1 %v3252_v11 }
0x161c   :  { %4780 = vmatpush3.msra.mxu1 %v3252_v11 }
0x161d   :  { %4917 = vmatprep.subr.bf16.mxu1 %v5135_v12  ;;  %4782 = vmatmul.mubr.msk.f32.vlgmr.msra.gmra.mrb[30].mxu1 %vm409_vm4, %v4339_v22 }
0x161e   :  { %v4791_v25 = vpop.f32.mrb[38].mxu0  ;;  %4784 = vmatprep.mubr.msk.f32.mxu1 %vm409_vm4, %v4340_v4 }
0x161f   :  { %v3469_v39 = vpop.f32.mrb[39].mxu0  ;;  %v3475_v38 = vadd.f32 %v4791_v25, %v4347_v31 }
0x1620   :  { %v3470_v14 = vadd.f32 %v4346_v5, %v3469_v39 }
0x1621   :  { %v3481_v1 = vsel %vm34_vm0, %v3475_v38, -inf  ;;  %4785 = vmatmul.mubr.msk.f32.gmra.mrb[32].mxu1 %vm409_vm4, %v4341_v23 }
0x1622   :  { %v3478_v15 = vsel %vm34_vm0, %v3470_v14, -inf  ;;  %4796 = vmatprep.mubr.msk.f32.mxu1 %vm5136_vm5, %v5137_v13  ;;  %v4353_v13 = vld [vmem:[%s6065_s3 + $0xe0] sm:$0xff] }
0x1623   :  { %3479 = vmax.xlane.f32.xlu0 %v3478_v15 }
0x1627   :  { %3482 = vmax.xlane.f32.xlu0 %v3481_v1 }
0x16b0   :  { %v3480_v8 = vpop.xlane.xlu0 %3479 }
0x16b1   :  { %v3484_v9 = vsub.f32 %v3470_v14, %v3480_v8 }
0x16b3   :  { %v3486_v10 = vmul.f32 1.442695, %v3484_v9 }
0x16b4   :  { %v3483_v20 = vpop.xlane.xlu0 %3482 }
0x16b5   :  { %5096 = vpow2.f32 %v3486_v10  ;;  %v3485_v12 = vsub.f32 %v3475_v38, %v3483_v20 }
0x16b7   :  { %v3488_v36 = vmul.f32 1.442695, %v3485_v12 }
0x16b9   :  { %5098 = vpow2.f32 %v3488_v36 }
0x16bf   :  { %v5097_v16 = vpop.eup %5096 }
0x16c0   :  { %v3490_v26 = vsel %vm34_vm0, %v5097_v16, 0.0 }
0x16c1   :  { %3491 = vadd.xlane.f32.xlu0 %v3490_v26 }
0x16c3   :  { %v5099_v35 = vpop.eup %5098 }
0x16c4   :  { %v3493_v17 = vsel %vm34_vm0, %v5099_v35, 0.0 }
0x16c5   :  { %3494 = vadd.xlane.f32.xlu1 %v3493_v17 }
0x16d6   :  { %3763 = vperm.xlu1 %5016, %v5609_v43  }
0x16d7   :  { %2237 = vperm.xlu0 %5013, %v5122_v18  }
0x16da   :  { %3767 = vperm.xlu1 %5016, %v5615_v44  }
0x16db   :  { %5015 = vset.pattern.permute.xlu0 %v5146_v52 }
0x16dc   :  { %3690 = vperm.xlu0 %5015, %v5603_v42  }
0x16de   :  { %5019 = vset.pattern.permute.xlu1 %v5148_v24 }
0x16df   :  { %3787 = vperm.xlu1 %5019, %v5615_v44  }
0x16e0   :  { %3694 = vperm.xlu0 %5015, %v5609_v43  }
0x16e3   :  { %3791 = vperm.xlu1 %5019, %v5622_v49  }
0x16e4   :  { %3698 = vperm.xlu0 %5015, %v5615_v44  }
0x16e8   :  { %3702 = vperm.xlu0 %5015, %v5622_v49  }
0x16ec   :  { %5017 = vset.pattern.permute.xlu0 %v5148_v24 }
0x16ed   :  { %3779 = vperm.xlu0 %5017, %v5603_v42  }
0x16f1   :  { %3783 = vperm.xlu0 %5017, %v5609_v43   ;;  %v4361_v43 = vld [vmem:[%s6066_s4 + $0x40] sm:$0xff] }
0x16f2   :  { %4815 = vmatprep.mubr.msk.f32.mxu0 %vm213_vm1, %v4361_v43 }
0x16f5   :  { %5018 = vset.pattern.permute.xlu0 %v5147_v54 }
0x16f6   :  { %3759 = vperm.xlu0 %5018, %v5603_v42   ;;  %v4356_v42 = vld [vmem:[%s6065_s3 + $0xf8] sm:$0xff] }
0x16fa   :  { %3771 = vperm.xlu0 %5018, %v5622_v49   ;;  %v5149_v49 = vmov 9  }
0x16fb   :  { %5021 = vset.pattern.permute.xlu1 %v5149_v49 }
0x16fc   :  { %3812 = vperm.xlu1 %5021, %v5124_v60  }
0x16fe   :  { %5020 = vset.pattern.permute.xlu0 %v5149_v49 }
0x16ff   :  { %3808 = vperm.xlu0 %5020, %v5123_v59  }
0x1700   :  { %3816 = vperm.xlu1 %5021, %v5126_v61  }
0x1703   :  { %3820 = vperm.xlu0 %5020, %v5125_v46  }
0x1704   :  { %3824 = vperm.xlu1 %5021, %v5654_v32  }
0x1707   :  { %3828 = vperm.xlu0 %5020, %v5127_v55  }
0x1708   :  { %3832 = vperm.xlu1 %5021, %v5779_v28  }
0x170b   :  { %3836 = vperm.xlu0 %5020, %v5829_v6  }
0x174e   :  { %v3492_v27 = vpop.xlane.xlu0 %3491 }
0x174f   :  { %5100 = vrcp.f32 %v3492_v27 }
0x1752   :  { %v3495_v56 = vpop.xlane.xlu1 %3494 }
0x1753   :  { %5102 = vrcp.f32 %v3495_v56 }
0x1756   :  { %v2238_v50 = vpop.permute.xlu0 %2237 }
0x1757   :  { %v2398_v51 = vadd.f32 %v5748_v40, %v2238_v50 }
0x1759   :  { %v5101_v7 = vpop.eup %5100 }
0x175a   :  { %v3498_v33 = vmul.f32 %v5101_v7, %v5097_v16 }
0x175b   :  { %v3691_v3 = vpop.permute.xlu0 %3690 }
0x175d   :  { %v5103_v29 = vpop.eup %5102 }
0x175e   :  { %v3499_v34 = vmul.f32 %v5103_v29, %v5099_v35 }
0x175f   :  { %v3695_v62 = vpop.permute.xlu0 %3694 }
0x1760   :  { %v4918_v37 = vpack.c.bf16 %v3499_v34, %v3498_v33 }
0x1762   :  { %4920 = vmatpush3.bf16.xpose.msk.msra.mxu1 %vm5347_vm6, %v4918_v37 }
0x1763   :  { %v3699_v0 = vpop.permute.xlu0 %3698 }
0x1769   :  { %4797 = vmatmul.mubr.msk.f32.vlgmr.msra.gmra.mrb[34].mxu1 %vm34_vm0, %v2398_v51 }
0x176a   :  { %4801 = vmatprep.mubr.msk.f32.mxu1 %vm409_vm4, %v4353_v13 }
0x183c   :  { %v3575_v40 = vpop.f32.mrb[34].mxu1 }
0x183d   :  { %v4798_v44 = vpop.f32.mrb[35].mxu1  ;;  %4799 = vmatprep.subr.mxu1 %v3575_v40 }
0x183e   :  { %4800 = vmatpush3.msra.mxu1 %v3575_v40  ;;  %v3764_v44 = vpop.permute.xlu1 %3763 }
0x183f   :  { %4802 = vmatmul.mubr.msk.f32.vlgmr.msra.gmra.mrb[30].mxu1 %vm409_vm4, %v4354_v57 }
0x1840   :  { %4804 = vmatprep.mubr.msk.f32.mxu1 %vm409_vm4, %v4355_v47 }
0x1842   :  { %v3768_v46 = vpop.permute.xlu1 %3767 }
0x1843   :  { %4805 = vmatmul.mubr.msk.f32.gmra.mrb[32].mxu1 %vm409_vm4, %v4356_v42 }
0x1912   :  { %v4803_v63 = vpop.f32.mrb[30].mxu1 }
0x1913   :  { %v3686_v30 = vadd.f32 %v4803_v63, %v5659_v41  ;;  %v3662_v11 = vpop.f32.mrb[31].mxu1  ;;  %v3703_v41 = vpop.permute.xlu0 %3702 }
0x1914   :  { %v3685_v2 = vadd.f32 %v3662_v11, %v5661_v48 }
0x1915   :  { %v5951_v5 = vadd.f32 %v3695_v62, %v3686_v30 }
0x1916   :  { %v5953_v25 = vadd.f32 %v3691_v3, %v3685_v2  ;;  %v4806_v31 = vpop.f32.mrb[32].mxu1  ;;  %v3788_v3 = vpop.permute.xlu1 %3787 }
0x1917   :  { %v3688_v39 = vadd.f32 %v4806_v31, %v5669_v58  ;;  %v3672_v32 = vpop.f32.mrb[33].mxu1  ;;  %v3710_v6 = vsel %vm34_vm0, %v5951_v5, 0.0  ;;  %v3780_v40 = vpop.permute.xlu0 %3779 }
0x1918   :  { %v3709_v28 = vsel %vm34_vm0, %v5953_v25, 0.0  ;;  %v3687_v14 = vadd.f32 %v3672_v32, %v5671_v45 }
0x1919   :  { %v5961_v38 = vadd.f32 %v3703_v41, %v3688_v39  ;;  %v3711_v15 = vadd.f32 %v3710_v6, %v3709_v28 }
0x191a   :  { %v5963_v48 = vadd.f32 %v3699_v0, %v3687_v14  ;;  %v3792_v2 = vpop.permute.xlu1 %3791 }
0x191b   :  { %v3714_v58 = vsel %vm34_vm0, %v5961_v38, 0.0  ;;  %v3784_v60 = vpop.permute.xlu0 %3783 }
0x191c   :  { %v3712_v1 = vsel %vm34_vm0, %v5963_v48, 0.0 }
0x191d   :  { %v3713_v8 = vadd.f32 %v3712_v1, %v3711_v15 }
0x191f   :  { %v3715_v9 = vadd.f32 %v3714_v58, %v3713_v8  ;;  %v3760_v61 = vpop.permute.xlu0 %3759  ;;  %v4362_v58 = vld [vmem:[%s6066_s4 + $0x48] sm:$0xff] }
0x1921   :  { %v3716_v10 = vrot.slane %v3715_v9, 4 }
0x1923   :  { %v3717_v20 = vadd.f32 %v3716_v10, %v3715_v9  ;;  %v3772_v62 = vpop.permute.xlu0 %3771  ;;  %v4363_v9 = vld [vmem:[%s6066_s4 + $0x50] sm:$0xff]  ;;  %v4364_v10 = vld [vmem:[%s6066_s4 + $0x58] sm:$0xff] }
0x1925   :  { %v3718_v12 = vrot.slane %v3717_v20, 2 }
0x1927   :  { %v3719_v36 = vadd.f32 %v3718_v12, %v3717_v20  ;;  %v4365_v20 = vld [vmem:[%s6066_s4 + $0x60] sm:$0xff]  ;;  %v4366_v12 = vld [vmem:[%s6066_s4 + $0x68] sm:$0xff] }
0x1929   :  { %v3720_v16 = vrot.slane %v3719_v36, 1 }
0x192b   :  { %v3721_v45 = vadd.f32 %v3720_v16, %v3719_v36  ;;  %v4367_v36 = vld [vmem:[%s6066_s4 + $0x70] sm:$0xff]  ;;  %v4368_v16 = vld [vmem:[%s6066_s4 + $0x78] sm:$0xff] }
0x192d   :  { %v3722_v26 = vmul.f32 0.03125, %v3721_v45  ;;  %v4377_v45 = vld [vmem:[%s6067_s5 + $0x20] sm:$0xff] }
0x192f   :  { %v3725_v35 = vsub.f32 %v5963_v48, %v3722_v26  ;;  %v3726_v17 = vsub.f32 %v5961_v38, %v3722_v26  ;;  %v3723_v18 = vsub.f32 %v5953_v25, %v3722_v26  ;;  %v3724_v53 = vsub.f32 %v5951_v5, %v3722_v26 }
0x1930   :  { %v5150_v26 = vmov 11  }
0x1931   :  { %v3729_v19 = vmul.f32 %v3725_v35, %v3725_v35  ;;  %v3727_v21 = vmul.f32 %v3723_v18, %v3723_v18  ;;  %v3728_v22 = vmul.f32 %v3724_v53, %v3724_v53  ;;  %v3730_v4 = vmul.f32 %v3726_v17, %v3726_v17  ;;  %5022 = vset.pattern.permute.xlu1 %v5150_v26 }
0x1932   :  { %5023 = vset.pattern.permute.xlu0 %v5150_v26 }
0x1933   :  { %v3731_v23 = vsel %vm34_vm0, %v3727_v21, 0.0  ;;  %v3732_v27 = vsel %vm34_vm0, %v3728_v22, 0.0  ;;  %v3734_v7 = vsel %vm34_vm0, %v3729_v19, 0.0  ;;  %v3736_v33 = vsel %vm34_vm0, %v3730_v4, 0.0  ;;  %v5131_v19 = vld [vmem:[%s6061_s6 + $0x18] sm:$0xff]  ;;  %v3809_v22 = vpop.permute.xlu0 %3808  ;;  %v3813_v4 = vpop.permute.xlu1 %3812 }
0x1934   :  { %v3733_v56 = vadd.f32 %v3732_v27, %v3731_v23  ;;  %v5152_v21 = vmov 17  }
0x1936   :  { %v3735_v29 = vadd.f32 %v3734_v7, %v3733_v56 }
0x1937   :  { %v3821_v23 = vpop.permute.xlu0 %3820  ;;  %v3817_v56 = vpop.permute.xlu1 %3816 }
0x1938   :  { %v3737_v34 = vadd.f32 %v3736_v33, %v3735_v29 }
0x193a   :  { %v3738_v37 = vrot.slane %v3737_v34, 4 }
0x193c   :  { %v3739_v50 = vadd.f32 %v3738_v37, %v3737_v34 }
0x193e   :  { %v3740_v51 = vrot.slane %v3739_v50, 2 }
0x1940   :  { %v3741_v13 = vadd.f32 %v3740_v51, %v3739_v50 }
0x1942   :  { %v3742_v52 = vrot.slane %v3741_v13, 1 }
0x1944   :  { %v3743_v54 = vadd.f32 %v3742_v52, %v3741_v13  ;;  %v3829_v52 = vpop.permute.xlu0 %3828 }
0x1946   :  { %v3744_v24 = vmul.f32 0.032258064, %v3743_v54 }
0x1948   :  { %5104 = vrsqrt.f32 %v3744_v24  ;;  %vm3747_vm12 = vcmp.eq.f32.partialorder %v3744_v24, inf  ;;  %v3750_v42 = vand.u32 2147483648, %v3744_v24  ;;  %vm3749_vm13 = vcmp.eq.f32.partialorder %v3744_v24, 0.0 }
0x1952   :  { %v5105_v57 = vpop.eup %5104 }
0x1953   :  { %v3746_v47 = vmul.f32 %v5105_v57, %v3744_v24 }
0x1955   :  { %v3748_v43 = vsel %vm3747_vm12, %v3744_v24, %v3746_v47 }
0x1956   :  { %v3751_v49 = vsel %vm3749_vm13, %v3750_v42, %v3748_v43 }
0x1957   :  { %v3752_v59 = vadd.f32 1e-06, %v3751_v49 }
0x1959   :  { %5106 = vrcp.f32 %v3752_v59 }
0x1963   :  { %v5107_v55 = vpop.eup %5106 }
0x1964   :  { %v3755_v63 = vmul.f32 %v5107_v55, %v3724_v53  ;;  %v3756_v0 = vmul.f32 %v5107_v55, %v3725_v35  ;;  %v3754_v30 = vmul.f32 %v5107_v55, %v3723_v18  ;;  %v3757_v11 = vmul.f32 %v5107_v55, %v3726_v17  ;;  %v5128_v35 = vld [vmem:[%s6061_s6] sm:$0xff]  ;;  %v5129_v17 = vld [vmem:[%s6061_s6 + $0x8] sm:$0xff]  ;;  %v5130_v18 = vld [vmem:[%s6061_s6 + $0x10] sm:$0xff] }
0x1965   :  { %4083 = vperm.xlu1 %5022, %v5128_v35   ;;  %4087 = vperm.xlu0 %5023, %v5129_v17   ;;  %v5151_v53 = vmov 16  }
0x1966   :  { %v3775_v31 = vmul.f32 %v3764_v44, %v3755_v63  ;;  %v3776_v39 = vmul.f32 %v3768_v46, %v3756_v0  ;;  %v3774_v32 = vmul.f32 %v3760_v61, %v3754_v30  ;;  %v3777_v6 = vmul.f32 %v3772_v62, %v3757_v11  ;;  %v3837_v46 = vpop.permute.xlu0 %3836 }
0x1968   :  { %v3795_v28 = vadd.f32 %v3784_v60, %v3775_v31  ;;  %v3794_v14 = vadd.f32 %v3780_v40, %v3774_v32  ;;  %v3796_v41 = vadd.f32 %v3788_v3, %v3776_v39  ;;  %v3797_v15 = vadd.f32 %v3792_v2, %v3777_v6  ;;  %v3825_v40 = vpop.permute.xlu1 %3824  ;;  %v4378_v39 = vld [vmem:[%s6067_s5 + $0x28] sm:$0xff]  ;;  %v4379_v32 = vld [vmem:[%s6067_s5 + $0x30] sm:$0xff]  ;;  %v4380_v6 = vld [vmem:[%s6067_s5 + $0x38] sm:$0xff] }
0x1969   :  { %4091 = vperm.xlu1 %5022, %v5130_v18   ;;  %5024 = vset.pattern.permute.xlu0 %v5151_v53 }
0x196a   :  { %v4921_v1 = vpack.c.bf16 %v3795_v28, %v3794_v14  ;;  %v4925_v8 = vpack.c.bf16 %v3797_v15, %v3796_v41  ;;  %4152 = vperm.xlu0 %5024, %v5128_v35  }
0x196c   :  { %4922 = vmatprep.subr.bf16.mxu0 %v4921_v1  ;;  %v3833_v55 = vpop.permute.xlu1 %3832 }
0x196d   :  { %4924 = vmatpush3.bf16.msra.mxu0 %v4921_v1  ;;  %4095 = vperm.xlu1 %5022, %v5131_v19  }
0x196e   :  { %4926 = vmatprep.subr.bf16.mxu0 %v4925_v8  ;;  %4164 = vperm.xlu0 %5024, %v5131_v19  }
0x1971   :  { %4928 = vmatpush3.bf16.msra.mxu0 %v4925_v8  ;;  %5025 = vset.pattern.permute.xlu1 %v5151_v53 }
0x1972   :  { %4156 = vperm.xlu1 %5025, %v5129_v17   ;;  %5027 = vset.pattern.permute.xlu0 %v5152_v21 }
0x1973   :  { %4176 = vperm.xlu0 %5027, %v5129_v17  }
0x1974   :  { %4816 = vmatmul.mubr.msk.f32.vlgmr.msra.gmra.mrb[40].mxu0 %vm213_vm1, %v4362_v58 }
0x1975   :  { %4818 = vmatprep.mubr.msk.f32.mxu0 %vm213_vm1, %v4363_v9 }
0x1976   :  { %4160 = vperm.xlu1 %5025, %v5130_v18  }
0x1978   :  { %4819 = vmatmul.mubr.msk.f32.gmra.mrb[42].mxu0 %vm213_vm1, %v4364_v10 }
0x1979   :  { %4821 = vmatprep.mubr.msk.f32.mxu0 %vm213_vm1, %v4365_v20 }
0x197a   :  { %5026 = vset.pattern.permute.xlu1 %v5152_v21 }
0x197b   :  { %4172 = vperm.xlu1 %5026, %v5128_v35  }
0x197c   :  { %4822 = vmatmul.mubr.msk.f32.gmra.mrb[44].mxu0 %vm213_vm1, %v4366_v12 }
0x197d   :  { %4824 = vmatprep.mubr.msk.f32.mxu0 %vm213_vm1, %v4367_v36 }
0x197f   :  { %4180 = vperm.xlu1 %5026, %v5130_v18  }
0x1980   :  { %4825 = vmatmul.mubr.msk.f32.gmra.mrb[46].mxu0 %vm213_vm1, %v4368_v16 }
0x1981   :  { %4843 = vmatprep.mubr.msk.f32.mxu0 %vm1968_vm9, %v4377_v45 }
0x1983   :  { %4184 = vperm.xlu1 %5026, %v5131_v19  }
0x19e4   :  { %v4084_v28 = vpop.permute.xlu1 %4083  ;;  %v4088_v41 = vpop.permute.xlu0 %4087 }
0x19e8   :  { %v4092_v15 = vpop.permute.xlu1 %4091 }
0x19ec   :  { %v4096_v17 = vpop.permute.xlu1 %4095 }
0x1a47   :  { %v4817_v27 = vpop.f32.mrb[40].mxu0 }
0x1a48   :  { %v3935_v7 = vadd.f32 %v4817_v27, %v3813_v4  ;;  %v3929_v29 = vpop.f32.mrb[41].mxu0 }
0x1a49   :  { %v3930_v33 = vadd.f32 %v3929_v29, %v3809_v22 }
0x1a4a   :  { %v3969_v34 = vmax.f32 %v3935_v7, 0.0 }
0x1a4b   :  { %v3968_v37 = vmax.f32 %v3930_v33, 0.0  ;;  %v4820_v50 = vpop.f32.mrb[42].mxu0 }
0x1a4c   :  { %v3945_v51 = vadd.f32 %v4820_v50, %v3821_v23  ;;  %v3939_v13 = vpop.f32.mrb[43].mxu0 }
0x1a4d   :  { %v4929_v54 = vpack.c.bf16 %v3969_v34, %v3968_v37  ;;  %v3940_v24 = vadd.f32 %v3939_v13, %v3817_v56 }
0x1a4e   :  { %v3971_v57 = vmax.f32 %v3945_v51, 0.0 }
0x1a4f   :  { %v3970_v44 = vmax.f32 %v3940_v24, 0.0  ;;  %v4823_v47 = vpop.f32.mrb[44].mxu0  ;;  %4930 = vmatprep.subr.bf16.mxu0 %v4929_v54 }
0x1a50   :  { %v3955_v42 = vadd.f32 %v4823_v47, %v3829_v52  ;;  %v3949_v43 = vpop.f32.mrb[45].mxu0  ;;  %4932 = vmatpush3.bf16.msra.mxu0 %v4929_v54 }
0x1a51   :  { %v4933_v49 = vpack.c.bf16 %v3971_v57, %v3970_v44  ;;  %v3950_v59 = vadd.f32 %v3949_v43, %v3825_v40 }
0x1a52   :  { %v3973_v60 = vmax.f32 %v3955_v42, 0.0 }
0x1a53   :  { %v3972_v61 = vmax.f32 %v3950_v59, 0.0  ;;  %v4826_v3 = vpop.f32.mrb[46].mxu0  ;;  %4934 = vmatprep.subr.bf16.mxu0 %v4933_v49 }
0x1a54   :  { %v3965_v62 = vadd.f32 %v4826_v3, %v3837_v46  ;;  %v3959_v63 = vpop.f32.mrb[47].mxu0  ;;  %4936 = vmatpush3.bf16.msra.mxu0 %v4933_v49  ;;  %v4157_v3 = vpop.permute.xlu1 %4156 }
0x1a55   :  { %v4937_v0 = vpack.c.bf16 %v3973_v60, %v3972_v61  ;;  %v3960_v30 = vadd.f32 %v3959_v63, %v3833_v55 }
0x1a56   :  { %v3975_v11 = vmax.f32 %v3965_v62, 0.0 }
0x1a57   :  { %v3974_v2 = vmax.f32 %v3960_v30, 0.0  ;;  %4938 = vmatprep.subr.bf16.mxu0 %v4937_v0 }
0x1a58   :  { %4940 = vmatpush3.bf16.msra.mxu0 %v4937_v0  ;;  %v4161_v30 = vpop.permute.xlu1 %4160 }
0x1a59   :  { %v4941_v31 = vpack.c.bf16 %v3975_v11, %v3974_v2 }
0x1a5b   :  { %4942 = vmatprep.subr.bf16.mxu0 %v4941_v31 }
0x1a5c   :  { %4944 = vmatpush3.bf16.msra.mxu0 %v4941_v31  ;;  %v4173_v31 = vpop.permute.xlu1 %4172 }
0x1a5f   :  { %4844 = vmatmul.mubr.msk.f32.vlgmr.msra.gmra.mrb[48].mxu0 %vm1968_vm9, %v4378_v39  ;;  %v4153_v39 = vpop.permute.xlu0 %4152 }
0x1a60   :  { %4846 = vmatprep.mubr.msk.f32.mxu0 %vm1968_vm9, %v4379_v32  ;;  %v4181_v32 = vpop.permute.xlu1 %4180 }
0x1a63   :  { %4847 = vmatmul.mubr.msk.f32.gmra.mrb[50].mxu0 %vm1968_vm9, %v4380_v6  ;;  %v4165_v6 = vpop.permute.xlu0 %4164 }
0x1b32   :  { %v4845_v14 = vpop.f32.mrb[48].mxu0 }
0x1b33   :  { %v4079_v1 = vadd.f32 %v4845_v14, %v5951_v5  ;;  %v4059_v8 = vpop.f32.mrb[49].mxu0 }
0x1b34   :  { %v4078_v58 = vadd.f32 %v4059_v8, %v5953_v25  ;;  %v4177_v8 = vpop.permute.xlu0 %4176 }
0x1b35   :  { %v4099_v9 = vadd.f32 %v4088_v41, %v4079_v1 }
0x1b36   :  { %v4098_v10 = vadd.f32 %v4084_v28, %v4078_v58  ;;  %v4848_v20 = vpop.f32.mrb[50].mxu0 }
0x1b37   :  { %v4103_v12 = vsel %vm34_vm0, %v4099_v9, 0.0  ;;  %v4081_v36 = vadd.f32 %v4848_v20, %v5961_v38  ;;  %v4069_v16 = vpop.f32.mrb[51].mxu0 }
0x1b38   :  { %v4102_v45 = vsel %vm34_vm0, %v4098_v10, 0.0  ;;  %v4080_v26 = vadd.f32 %v4069_v16, %v5963_v48 }
0x1b39   :  { %v4104_v35 = vadd.f32 %v4103_v12, %v4102_v45  ;;  %v4101_v18 = vadd.f32 %v4096_v17, %v4081_v36  ;;  %v4185_v12 = vpop.permute.xlu1 %4184 }
0x1b3a   :  { %v4100_v53 = vadd.f32 %v4092_v15, %v4080_v26 }
0x1b3b   :  { %v4107_v25 = vsel %vm34_vm0, %v4101_v18, 0.0 }
0x1b3c   :  { %v4105_v5 = vsel %vm34_vm0, %v4100_v53, 0.0 }
0x1b3d   :  { %v4106_v19 = vadd.f32 %v4105_v5, %v4104_v35 }
0x1b3f   :  { %v4108_v21 = vadd.f32 %v4107_v25, %v4106_v19 }
0x1b41   :  { %v4109_v22 = vrot.slane %v4108_v21, 4 }
0x1b43   :  { %v4110_v4 = vadd.f32 %v4109_v22, %v4108_v21 }
0x1b45   :  { %v4111_v23 = vrot.slane %v4110_v4, 2 }
0x1b47   :  { %v4112_v27 = vadd.f32 %v4111_v23, %v4110_v4 }
0x1b49   :  { %v4113_v38 = vrot.slane %v4112_v27, 1 }
0x1b4b   :  { %v4114_v56 = vadd.f32 %v4113_v38, %v4112_v27 }
0x1b4d   :  { %v4115_v7 = vmul.f32 0.03125, %v4114_v56 }
0x1b4f   :  { %v4118_v29 = vsub.f32 %v4100_v53, %v4115_v7  ;;  %v4119_v33 = vsub.f32 %v4101_v18, %v4115_v7  ;;  %v4116_v48 = vsub.f32 %v4098_v10, %v4115_v7  ;;  %v4117_v34 = vsub.f32 %v4099_v9, %v4115_v7 }
0x1b51   :  { %v4122_v37 = vmul.f32 %v4118_v29, %v4118_v29  ;;  %v4120_v50 = vmul.f32 %v4116_v48, %v4116_v48  ;;  %v4121_v51 = vmul.f32 %v4117_v34, %v4117_v34  ;;  %v4123_v13 = vmul.f32 %v4119_v33, %v4119_v33 }
0x1b53   :  { %v4124_v52 = vsel %vm34_vm0, %v4120_v50, 0.0  ;;  %v4125_v54 = vsel %vm34_vm0, %v4121_v51, 0.0  ;;  %v4127_v40 = vsel %vm34_vm0, %v4122_v37, 0.0  ;;  %v4129_v44 = vsel %vm34_vm0, %v4123_v13, 0.0 }
0x1b54   :  { %v4126_v24 = vadd.f32 %v4125_v54, %v4124_v52 }
0x1b56   :  { %v4128_v57 = vadd.f32 %v4127_v40, %v4126_v24 }
0x1b58   :  { %v4130_v47 = vadd.f32 %v4129_v44, %v4128_v57 }
0x1b5a   :  { %v4131_v42 = vrot.slane %v4130_v47, 4 }
0x1b5c   :  { %v4132_v43 = vadd.f32 %v4131_v42, %v4130_v47 }
0x1b5e   :  { %v4133_v49 = vrot.slane %v4132_v43, 2 }
0x1b60   :  { %v4134_v59 = vadd.f32 %v4133_v49, %v4132_v43 }
0x1b62   :  { %v4135_v60 = vrot.slane %v4134_v59, 1 }
0x1b64   :  { %v4136_v46 = vadd.f32 %v4135_v60, %v4134_v59 }
0x1b66   :  { %v4137_v61 = vmul.f32 0.032258064, %v4136_v46 }
0x1b68   :  { %5108 = vrsqrt.f32 %v4137_v61  ;;  %vm4140_vm14 = vcmp.eq.f32.partialorder %v4137_v61, inf  ;;  %v4143_v63 = vand.u32 2147483648, %v4137_v61  ;;  %vm4142_vm15 = vcmp.eq.f32.partialorder %v4137_v61, 0.0 }
0x1b72   :  { %v5109_v55 = vpop.eup %5108 }
0x1b73   :  { %v4139_v62 = vmul.f32 %v5109_v55, %v4137_v61 }
0x1b75   :  { %v4141_v0 = vsel %vm4140_vm14, %v4137_v61, %v4139_v62 }
0x1b76   :  { %v4144_v11 = vsel %vm4142_vm15, %v4143_v63, %v4141_v0 }
0x1b77   :  { %v4145_v2 = vadd.f32 1e-06, %v4144_v11 }
0x1b79   :  { %5110 = vrcp.f32 %v4145_v2 }
0x1b83   :  { %v5111_v28 = vpop.eup %5110 }
0x1b84   :  { %v4148_v14 = vmul.f32 %v5111_v28, %v4117_v34  ;;  %v4149_v41 = vmul.f32 %v5111_v28, %v4118_v29  ;;  %v4147_v15 = vmul.f32 %v5111_v28, %v4116_v48  ;;  %v4150_v1 = vmul.f32 %v5111_v28, %v4119_v33 }
0x1b86   :  { %v4168_v58 = vmul.f32 %v4157_v3, %v4148_v14  ;;  %v4169_v9 = vmul.f32 %v4161_v30, %v4149_v41  ;;  %v4167_v10 = vmul.f32 %v4153_v39, %v4147_v15  ;;  %v4170_v20 = vmul.f32 %v4165_v6, %v4150_v1 }
0x1b88   :  { %v4187_v36 = vadd.f32 %v4173_v31, %v4167_v10  ;;  %v4189_v16 = vadd.f32 %v4181_v32, %v4169_v9  ;;  %v4190_v45 = vadd.f32 %v4185_v12, %v4170_v20  ;;  %v4188_v26 = vadd.f32 %v4177_v8, %v4168_v58 }
0x1b8a   :  { %4191 = vst.msk [vmem:[%s6068_s7] sm:$0xff] %vm34_vm0, %v4187_v36  ;;  %4193 = vst.msk [vmem:[%s6068_s7 + $0x10] sm:$0xff] %vm34_vm0, %v4189_v16 }
0x1b8b   :  { %4194 = vst.msk [vmem:[%s6068_s7 + $0x18] sm:$0xff] %vm34_vm0, %v4190_v45  ;;  %4192 = vst.msk [vmem:[%s6068_s7 + $0x8] sm:$0xff] %vm34_vm0, %v4188_v26 }

</bundles_post_ra>
